<compile_context>
chip_gen: v5e
topology: v5e:2x2
jax: 0.10.0
libtpu: 0.0.40
codegen_flags: <defaults>
</compile_context>

<pallas_src>
import jax
import jax.numpy as jnp
from jax.experimental import pallas as pl
from jax.experimental.pallas import tpu as pltpu

# ---------------- config (config_gan) ----------------
CONFIG_GAN = dict(nz=16, ngf=4, nc=4)     # small, deterministic test sizes
BN_EPS = 1e-5


# ---------------- fused Pallas kernel: layer4 (ConvT+BN+ReLU) + layer5 -------
def _fused_l4_l5_kernel(w4_ref, p_ref, b4_ref, w5_ref, o_ref):
    # Layer 4: [C4=8, K=256] @ [K, TM] on the MXU, f32 accumulate.
    acc = jnp.dot(w4_ref[...], p_ref[...], preferred_element_type=jnp.float32)
    h = jnp.maximum(acc + b4_ref[...], 0.0)            # folded-BN bias + ReLU
    # Layer 5 (1x1 ConvT, no bias) fused as epilogue: [nc=4, 8] @ [8, TM].
    out = jnp.dot(w5_ref[...], h.astype(jnp.bfloat16),
                  preferred_element_type=jnp.float32)
    o_ref[...] = jnp.tanh(out).astype(o_ref.dtype)     # EUP transcendental


def _pick_tm(m):
    """grid=1 on single-TC chips (v5e/v6e); grid=2 on v7x (one block/core)."""
    try:
        kind = jax.devices()[0].device_kind.lower()
    except Exception:
        kind = ""
    two_cores = ("v7" in kind) or ("7x" in kind)
    if two_cores and m % 256 == 0:
        return m // 2          # multiple of 128, one block per TensorCore
    return m                   # full-M block: no per-step pipeline overhead


def fused_l4_l5(w4_mat, patches_t, b4_col, w5_mat):
    """tanh(W5 @ relu(W4 @ patches + b4)) -> [nc, M] in one pallas_call."""
    c4, k = w4_mat.shape
    k2, m = patches_t.shape
    nc, c4b = w5_mat.shape
    assert k == k2 and c4 == c4b
    tm = _pick_tm(m)
    assert m % tm == 0 and (tm == m or tm % 128 == 0)
    grid = (m // tm,)

    return pl.pallas_call(
        _fused_l4_l5_kernel,
        out_shape=jax.ShapeDtypeStruct((nc, m), jnp.float32),
        grid_spec=pl.GridSpec(
            grid=grid,
            in_specs=[
                pl.BlockSpec((c4, k), lambda i: (0, 0)),    # W4 (BN folded)
                pl.BlockSpec((k, tm), lambda i: (0, i)),    # patch column tile
                pl.BlockSpec((c4, 1), lambda i: (0, 0)),    # folded-BN bias
                pl.BlockSpec((nc, c4), lambda i: (0, 0)),   # W5 (1x1 conv)
            ],
            out_specs=pl.BlockSpec((nc, tm), lambda i: (0, i)),  # lane-dense M
        ),
        compiler_params=pltpu.CompilerParams(
            dimension_semantics=("parallel",)),
    )(w4_mat, patches_t, b4_col, w5_mat)


# ---------------- glue: transposed-conv -> stride-1 conv matmul ---------------
def zero_insert(x, s):
    """x: [C, B, H, W] -> zero-inserted with stride s along H, W."""
    if s == 1:
        return x
    c, b, h, w = x.shape
    up = jnp.zeros((c, b, (h - 1) * s + 1, (w - 1) * s + 1), x.dtype)
    return up.at[:, :, ::s, ::s].set(x)


def im2col_t(x, kh, kw, pad):
    """x: [C, B, H, W] -> patches_T [C*kh*kw, B*Ho*Wo] for a stride-1 conv."""
    c, b, h, w = x.shape
    xp = jnp.pad(x, ((0, 0), (0, 0), (pad, pad), (pad, pad)))
    ho = h + 2 * pad - kh + 1
    wo = w + 2 * pad - kw + 1
    cols = []
    for i in range(kh):
        for j in range(kw):
            cols.append(xp[:, :, i:i + ho, j:j + wo])          # [C, B, Ho, Wo]
    patches = jnp.stack(cols, axis=1)                          # [C, kh*kw, B, Ho, Wo]
    patches = patches.reshape(c * kh * kw, b * ho * wo)        # (c,i,j) feature order
    return patches, ho, wo, b


# ---------------- one-time parameter preprocessing (hoisted weight prep) ------
def prepare_params(params):
    """Fold BN into flipped/channel-swapped conv weight matrices once,
    build bias columns, cast the MXU operand to bf16 — off the forward path."""
    def fold(w_ct, bn):
        gamma, beta, mean, var = bn
        scale = gamma / jnp.sqrt(var + BN_EPS)
        bias = beta - mean * scale
        cin, cout, kh, kw = w_ct.shape
        w_conv = jnp.flip(w_ct, axis=(2, 3)).transpose(1, 0, 2, 3)   # [Cout,Cin,k,k]
        w_mat = w_conv.reshape(cout, cin * kh * kw) * scale[:, None]  # BN fold
        return w_mat, bias.reshape(cout, 1)

    w1, b1 = fold(params["w1"], params["bn1"])
    w2, b2 = fold(params["w2"], params["bn2"])
    w3, b3 = fold(params["w3"], params["bn3"])
    w4, b4 = fold(params["w4"], params["bn4"])
    w5 = params["w5"][:, :, 0, 0].T                 # 1x1 ConvT -> [nc, 2*ngf]
    return dict(
        w1=w1.astype(jnp.float32), b1=b1.astype(jnp.float32),
        w2=w2.astype(jnp.float32), b2=b2.astype(jnp.float32),
        w3=w3.astype(jnp.float32), b3=b3.astype(jnp.float32),
        w4=w4.astype(jnp.bfloat16), b4=b4.astype(jnp.float32),  # MXU operand
        w5=w5.astype(jnp.bfloat16),
    )


# ---------------- tiny early layers: plain XLA matmul (per perf review) -------
def _xla_convt_bn_relu(x_cbhw, w_mat, bias_col, *, k, stride, pad):
    """ConvT(k, stride, pad, bias=False) + folded BN + ReLU, M <= 512:
    a dedicated pallas_call here is pure launch overhead, so leave it to XLA."""
    x_up = zero_insert(x_cbhw, stride)
    patches_t, ho, wo, b = im2col_t(x_up, k, k, k - 1 - pad)
    out_t = jnp.dot(w_mat, patches_t, preferred_element_type=jnp.float32)
    out_t = jnp.maximum(out_t + bias_col, 0.0)
    return out_t.reshape(w_mat.shape[0], b, ho, wo)


# ---------------- full Generator forward --------------------------------------
def generator_forward(z, prep):
    """z: [B, nz, 1, 1] (NCHW)  ->  image [B, nc, 32, 32] in [-1, 1]."""
    x = z.astype(jnp.float32).transpose(1, 0, 2, 3)            # CBHW layout
    # ConvT(nz -> 16*ngf, 4, s1, p0) + BN + ReLU                1x1  -> 4x4
    x = _xla_convt_bn_relu(x, prep["w1"], prep["b1"], k=4, stride=1, pad=0)
    # ConvT(16*ngf -> 8*ngf, 4, s2, p1) + BN + ReLU             4x4  -> 8x8
    x = _xla_convt_bn_relu(x, prep["w2"], prep["b2"], k=4, stride=2, pad=1)
    # ConvT(8*ngf -> 4*ngf, 4, s2, p1) + BN + ReLU              8x8  -> 16x16
    x = _xla_convt_bn_relu(x, prep["w3"], prep["b3"], k=4, stride=2, pad=1)
    # ConvT(4*ngf -> 2*ngf, 4, s2, p1) + BN + ReLU              16x16 -> 32x32
    # fused with ConvT(2*ngf -> nc, 1, s1, p0) + Tanh (one Pallas kernel)
    x_up = zero_insert(x, 2)
    patches_t, ho, wo, b = im2col_t(x_up, 4, 4, 2)              # K=256, M=B*1024
    out_t = fused_l4_l5(prep["w4"], patches_t.astype(jnp.bfloat16),
                        prep["b4"], prep["w5"])
    nc = prep["w5"].shape[0]
    return out_t.reshape(nc, b, ho, wo).transpose(1, 0, 2, 3)   # back to NCHW


# ---------------- deterministic parameter init --------------------------------
def init_params(key):
    nz, ngf, nc = CONFIG_GAN["nz"], CONFIG_GAN["ngf"], CONFIG_GAN["nc"]
    ks = jax.random.split(key, 32)
    it = iter(ks)

    def ctw(cin, cout, kh, kw):
        return 0.02 * jax.random.normal(next(it), (cin, cout, kh, kw), jnp.float32)

    def bnp(c):
        gamma = 1.0 + 0.02 * jax.random.normal(next(it), (c,), jnp.float32)
        beta = 0.02 * jax.random.normal(next(it), (c,), jnp.float32)
        mean = 0.02 * jax.random.normal(next(it), (c,), jnp.float32)
        var = jax.random.uniform(next(it), (c,), jnp.float32, 0.5, 1.5)
        return gamma, beta, mean, var

    return {
        "w1": ctw(nz, ngf * 16, 4, 4), "bn1": bnp(ngf * 16),
        "w2": ctw(ngf * 16, ngf * 8, 4, 4), "bn2": bnp(ngf * 8),
        "w3": ctw(ngf * 8, ngf * 4, 4, 4), "bn3": bnp(ngf * 4),
        "w4": ctw(ngf * 4, ngf * 2, 4, 4), "bn4": bnp(ngf * 2),
        "w5": ctw(ngf * 2, nc, 1, 1),
    }


if __name__ == "__main__":
    key = jax.random.PRNGKey(0)
    k_z, k_p = jax.random.split(key)

    B, nz, nc = 2, CONFIG_GAN["nz"], CONFIG_GAN["nc"]
    z = jax.random.normal(k_z, (B, nz, 1, 1), jnp.float32)
    prep = prepare_params(init_params(k_p))         # one-time weight prep

    fwd = jax.jit(generator_forward)
    out = jax.block_until_ready(fwd(z, prep))

    assert out.shape == (B, nc, 32, 32), out.shape  # 1 -> 4 -> 8 -> 16 -> 32 -> 32
    assert bool(jnp.all(jnp.isfinite(out)))
    assert bool(jnp.all(jnp.abs(out) <= 1.0))       # Tanh range
    print("KERNEL_OK")
</pallas_src>

<mosaic_0001>
module attributes {stable_mosaic.version = 11 : i64} {
  func.func @_fused_l4_l5_kernel(%arg0: i32, %arg1: memref<8x256xbf16, #tpu.memory_space<vmem>>, %arg2: memref<256x2048xbf16, #tpu.memory_space<vmem>>, %arg3: memref<8x1xf32, #tpu.memory_space<vmem>>, %arg4: memref<4x8xbf16, #tpu.memory_space<vmem>>, %arg5: memref<4x2048xf32, #tpu.memory_space<vmem>>) attributes {dimension_semantics = [#tpu.dimension_semantics<parallel>], iteration_bounds = array<i64: 1>, scalar_prefetch = 0 : i64, scratch_operands = 0 : i64, tpu.core_type = #tpu.core_type<tc>, window_params = [{pipeline_mode = #tpu.pipeline_mode<synchronous>, transform_indices = @transform_0, window_bounds = array<i64: 8, 256>}, {transform_indices = @transform_1, window_bounds = array<i64: 256, 2048>}, {pipeline_mode = #tpu.pipeline_mode<synchronous>, transform_indices = @transform_2, window_bounds = array<i64: 8, 1>}, {pipeline_mode = #tpu.pipeline_mode<synchronous>, transform_indices = @transform_3, window_bounds = array<i64: 4, 8>}, {transform_indices = @transform_4, window_bounds = array<i64: 4, 2048>}]} {
    %c0 = arith.constant 0 : index
    %c0_0 = arith.constant 0 : index
    %0 = vector.load %arg1[%c0, %c0_0] : memref<8x256xbf16, #tpu.memory_space<vmem>>, vector<8x256xbf16>
    %c0_1 = arith.constant 0 : index
    %c0_2 = arith.constant 0 : index
    %1 = vector.load %arg2[%c0_1, %c0_2] : memref<256x2048xbf16, #tpu.memory_space<vmem>>, vector<256x2048xbf16>
    %cst = arith.constant dense<0.000000e+00> : vector<8x2048xf32>
    %2 = tpu.matmul %0, %1, %cst {dimension_numbers = #tpu.dot_dimension_numbers<[1], [0], [0], [1], [0, 0, 1, 1], [], []>} : vector<8x256xbf16>, vector<256x2048xbf16>, vector<8x2048xf32> -> vector<8x2048xf32>
    %c0_3 = arith.constant 0 : index
    %c0_4 = arith.constant 0 : index
    %3 = vector.load %arg3[%c0_3, %c0_4] : memref<8x1xf32, #tpu.memory_space<vmem>>, vector<8x1xf32>
    %4 = vector.broadcast %3 : vector<8x1xf32> to vector<8x2048xf32>
    %5 = arith.addf %2, %4 : vector<8x2048xf32>
    %cst_5 = arith.constant 0.000000e+00 : f32
    %6 = vector.broadcast %cst_5 : f32 to vector<8x2048xf32>
    %7 = arith.maximumf %5, %6 : vector<8x2048xf32>
    %c0_6 = arith.constant 0 : index
    %c0_7 = arith.constant 0 : index
    %8 = vector.load %arg4[%c0_6, %c0_7] : memref<4x8xbf16, #tpu.memory_space<vmem>>, vector<4x8xbf16>
    %9 = arith.truncf %7 : vector<8x2048xf32> to vector<8x2048xbf16>
    %cst_8 = arith.constant dense<0.000000e+00> : vector<4x2048xf32>
    %10 = tpu.matmul %8, %9, %cst_8 {dimension_numbers = #tpu.dot_dimension_numbers<[1], [0], [0], [1], [0, 0, 1, 1], [], []>} : vector<4x8xbf16>, vector<8x2048xbf16>, vector<4x2048xf32> -> vector<4x2048xf32>
    %11 = math.tanh %10 : vector<4x2048xf32>
    %c0_9 = arith.constant 0 : index
    %c0_10 = arith.constant 0 : index
    %12 = vector.load %arg5[%c0_9, %c0_10] : memref<4x2048xf32, #tpu.memory_space<vmem>>, vector<4x2048xf32>
    tpu.vector_store %arg5[%c0_9, %c0_10], %11 {strides = array<i32>} : memref<4x2048xf32, #tpu.memory_space<vmem>>, vector<4x2048xf32>,
    return
  }
  func.func @transform_0(%arg0: i32) -> (i32, i32) {
    %c0_i32 = arith.constant 0 : i32
    %c0_i32_0 = arith.constant 0 : i32
    %c0_i32_1 = arith.constant 0 : i32
    return %c0_i32, %c0_i32_0 : i32, i32
  }
  func.func @transform_1(%arg0: i32) -> (i32, i32) {
    %c0_i32 = arith.constant 0 : i32
    %c0_i32_0 = arith.constant 0 : i32
    return %c0_i32, %arg0 : i32, i32
  }
  func.func @transform_2(%arg0: i32) -> (i32, i32) {
    %c0_i32 = arith.constant 0 : i32
    %c0_i32_0 = arith.constant 0 : i32
    %c0_i32_1 = arith.constant 0 : i32
    return %c0_i32, %c0_i32_0 : i32, i32
  }
  func.func @transform_3(%arg0: i32) -> (i32, i32) {
    %c0_i32 = arith.constant 0 : i32
    %c0_i32_0 = arith.constant 0 : i32
    %c0_i32_1 = arith.constant 0 : i32
    return %c0_i32, %c0_i32_0 : i32, i32
  }
  func.func @transform_4(%arg0: i32) -> (i32, i32) {
    %c0_i32 = arith.constant 0 : i32
    %c0_i32_0 = arith.constant 0 : i32
    return %c0_i32, %arg0 : i32, i32
  }
}

</mosaic_0001>

<bundles_post_ra>
// kernel: generator_forward.1
= control target key start
LH: loop header
LB: loop body
LE: loop exit
PB: predicated region body
PF: predicated region fallthrough
CT: control target
= control target key end

     0   :  { %vm2021_vm0 = vcmask 1043456   ;;  %vm2017_vm1 = vcmask 64512   ;;  %s5404_s1 = inlined_call_operand.vmem [shape: bf16[256,2048], index: 1, kind: input, shape index: {}]   ;;  %s5405_s0 = inlined_call_operand.vmem [shape: bf16[8,256], index: 0, kind: input, shape index: {}]   ;;  %s5406_s2 = inlined_call_operand.vmem [shape: f32[8,1], index: 2, kind: input, shape index: {}]   ;;  %s5407_s3 = inlined_call_operand.vmem [shape: bf16[4,8], index: 3, kind: input, shape index: {}]   ;;  %s5408_s4 = inlined_call_operand.vmem [shape: f32[4,2048], index: 4, kind: output, shape index: {}]  }
   0x1   :  { %v2796_v0 = vld [vmem:[%s5404_s1 + $0x380] sm:$0xf]  ;;  %v3498_v5 = vld [vmem:[%s5404_s1 + $0x384] sm:$0xf] }
   0x2   :  { %v3506_v1 = vld [vmem:[%s5404_s1 + $0x3bc] sm:$0xf0]  ;;  %v2798_v6 = vld [vmem:[%s5404_s1 + $0x3c0] sm:$0xf0] }
   0x3   :  { %v3308_v2 = vld [vmem:[%s5404_s1 + $0x780] sm:$0xf]  ;;  %v2797_v3 = vor.u32 %v3506_v1, %v2796_v0  ;;  %v2801_v8 = vor.u32 %v3498_v5, %v2798_v6  ;;  %v3626_v9 = vld [vmem:[%s5404_s1 + $0x784] sm:$0xf] }
   0x4   :  { %v3634_v4 = vld [vmem:[%s5404_s1 + $0x7bc] sm:$0xf0]  ;;  %v3310_v10 = vld [vmem:[%s5404_s1 + $0x7c0] sm:$0xf0] }
   0x5   :  { %v3309_v7 = vor.u32 %v3634_v4, %v3308_v2  ;;  %v2732_v11 = vld [vmem:[%s5404_s1 + $0x300] sm:$0xf]  ;;  %1568 = vmatpush.bf16.msra.mxu0 %v2797_v3  ;;  %v3313_v12 = vor.u32 %v3626_v9, %v3310_v10  ;;  %1594 = vmatpush.bf16.msra.mxu2 %v2801_v8  ;;  %v3482_v18 = vld [vmem:[%s5404_s1 + $0x304] sm:$0xf] }
   0x6   :  { %v3490_v13 = vld [vmem:[%s5404_s1 + $0x33c] sm:$0xf0]  ;;  %v2734_v19 = vld [vmem:[%s5404_s1 + $0x340] sm:$0xf0] }
   0x7   :  { %v3244_v14 = vld [vmem:[%s5404_s1 + $0x700] sm:$0xf]  ;;  %1581 = vmatpush.bf16.msra.mxu1 %v3309_v7  ;;  %v2733_v16 = vor.u32 %v3490_v13, %v2732_v11  ;;  %v3610_v20 = vld [vmem:[%s5404_s1 + $0x704] sm:$0xf]  ;;  %1607 = vmatpush.bf16.msra.mxu3 %v3313_v12  ;;  %v2737_v21 = vor.u32 %v3482_v18, %v2734_v19 }
   0x8   :  { %v3618_v15 = vld [vmem:[%s5404_s1 + $0x73c] sm:$0xf0]  ;;  %v3246_v22 = vld [vmem:[%s5404_s1 + $0x740] sm:$0xf0] }
   0x9   :  { %v3245_v17 = vor.u32 %v3618_v15, %v3244_v14  ;;  %v2668_v23 = vld [vmem:[%s5404_s1 + $0x280] sm:$0xf]  ;;  %v3249_v25 = vor.u32 %v3610_v20, %v3246_v22  ;;  %v3466_v28 = vld [vmem:[%s5404_s1 + $0x284] sm:$0xf]  ;;  %1569 = vmatpush.bf16.msra.mxu0 %v2733_v16  ;;  %1595 = vmatpush.bf16.msra.mxu2 %v2737_v21 }
   0xa   :  { %v3474_v24 = vld [vmem:[%s5404_s1 + $0x2bc] sm:$0xf0]  ;;  %v2670_v30 = vld [vmem:[%s5404_s1 + $0x2c0] sm:$0xf0] }
   0xb   :  { %v3180_v26 = vld [vmem:[%s5404_s1 + $0x680] sm:$0xf]  ;;  %v2669_v29 = vor.u32 %v3474_v24, %v2668_v23  ;;  %v3594_v31 = vld [vmem:[%s5404_s1 + $0x684] sm:$0xf]  ;;  %1582 = vmatpush.bf16.msra.mxu1 %v3245_v17  ;;  %v2673_v34 = vor.u32 %v3466_v28, %v2670_v30  ;;  %1608 = vmatpush.bf16.msra.mxu3 %v3249_v25  ;;  %v2804_v28 = vld [vmem:[%s5404_s1 + $0x388] sm:$0xf] }
   0xc   :  { %v3602_v27 = vld [vmem:[%s5404_s1 + $0x6bc] sm:$0xf0]  ;;  %v3182_v32 = vld [vmem:[%s5404_s1 + $0x6c0] sm:$0xf0]  ;;  %v3316_v30 = vld [vmem:[%s5404_s1 + $0x788] sm:$0xf] }
   0xd   :  { %v3181_v33 = vor.u32 %v3602_v27, %v3180_v26  ;;  %v2604_v35 = vld [vmem:[%s5404_s1 + $0x200] sm:$0xf]  ;;  %v3185_v38 = vor.u32 %v3594_v31, %v3182_v32  ;;  %v3450_v40 = vld [vmem:[%s5404_s1 + $0x204] sm:$0xf]  ;;  %1570 = vmatpush.bf16.msra.mxu0 %v2669_v29  ;;  %1596 = vmatpush.bf16.msra.mxu2 %v2673_v34  ;;  %v3507_v29 = vld [vmem:[%s5404_s1 + $0x3c4] sm:$0xf0] }
   0xe   :  { %v3458_v36 = vld [vmem:[%s5404_s1 + $0x23c] sm:$0xf0]  ;;  %v2606_v41 = vld [vmem:[%s5404_s1 + $0x240] sm:$0xf0]  ;;  %v3635_v32 = vld [vmem:[%s5404_s1 + $0x7c4] sm:$0xf0] }
   0xf   :  { %v3116_v37 = vld [vmem:[%s5404_s1 + $0x600] sm:$0xf]  ;;  %v3578_v42 = vld [vmem:[%s5404_s1 + $0x604] sm:$0xf]  ;;  %v2605_v44 = vor.u32 %v3458_v36, %v2604_v35  ;;  %1583 = vmatpush.bf16.msra.mxu1 %v3181_v33  ;;  %v2609_v46 = vor.u32 %v3450_v40, %v2606_v41  ;;  %1609 = vmatpush.bf16.msra.mxu3 %v3185_v38  ;;  %v3499_v33 = vld [vmem:[%s5404_s1 + $0x38c] sm:$0xf]  ;;  %v2805_v40 = vor.u32 %v3507_v29, %v2804_v28 }
  0x10   :  { %v3586_v39 = vld [vmem:[%s5404_s1 + $0x63c] sm:$0xf0]  ;;  %v3118_v43 = vld [vmem:[%s5404_s1 + $0x640] sm:$0xf0]  ;;  %v2806_v34 = vld [vmem:[%s5404_s1 + $0x3c8] sm:$0xf0]  ;;  %v3317_v41 = vor.u32 %v3635_v32, %v3316_v30 }
  0x11   :  { %v3117_v45 = vor.u32 %v3586_v39, %v3116_v37  ;;  %v2540_v47 = vld [vmem:[%s5404_s1 + $0x180] sm:$0xf]  ;;  %v3121_v50 = vor.u32 %v3578_v42, %v3118_v43  ;;  %v3434_v52 = vld [vmem:[%s5404_s1 + $0x184] sm:$0xf]  ;;  %1571 = vmatpush.bf16.msra.mxu0 %v2605_v44  ;;  %1597 = vmatpush.bf16.msra.mxu2 %v2609_v46  ;;  %v3627_v37 = vld [vmem:[%s5404_s1 + $0x78c] sm:$0xf]  ;;  %v2809_v42 = vor.u32 %v3499_v33, %v2806_v34 }
  0x12   :  { %v3442_v48 = vld [vmem:[%s5404_s1 + $0x1bc] sm:$0xf0]  ;;  %v2542_v53 = vld [vmem:[%s5404_s1 + $0x1c0] sm:$0xf0]  ;;  %v3318_v38 = vld [vmem:[%s5404_s1 + $0x7c8] sm:$0xf0] }
  0x13   :  { %v3052_v49 = vld [vmem:[%s5404_s1 + $0x580] sm:$0xf]  ;;  %v3562_v54 = vld [vmem:[%s5404_s1 + $0x584] sm:$0xf]  ;;  %v2541_v56 = vor.u32 %v3442_v48, %v2540_v47  ;;  %1584 = vmatpush.bf16.msra.mxu1 %v3117_v45  ;;  %v2545_v58 = vor.u32 %v3434_v52, %v2542_v53  ;;  %1610 = vmatpush.bf16.msra.mxu3 %v3121_v50  ;;  %v2740_v43 = vld [vmem:[%s5404_s1 + $0x308] sm:$0xf]  ;;  %v3321_v46 = vor.u32 %v3627_v37, %v3318_v38 }
  0x14   :  { %v3570_v51 = vld [vmem:[%s5404_s1 + $0x5bc] sm:$0xf0]  ;;  %v3054_v55 = vld [vmem:[%s5404_s1 + $0x5c0] sm:$0xf0]  ;;  %v3491_v44 = vld [vmem:[%s5404_s1 + $0x344] sm:$0xf0] }
  0x15   :  { %v3053_v57 = vor.u32 %v3570_v51, %v3052_v49  ;;  %v2476_v59 = vld [vmem:[%s5404_s1 + $0x100] sm:$0xf]  ;;  %v3057_v62 = vor.u32 %v3562_v54, %v3054_v55  ;;  %v3418_v0 = vld [vmem:[%s5404_s1 + $0x104] sm:$0xf]  ;;  %1572 = vmatpush.bf16.msra.mxu0 %v2541_v56  ;;  %1598 = vmatpush.bf16.msra.mxu2 %v2545_v58  ;;  %v3252_v45 = vld [vmem:[%s5404_s1 + $0x708] sm:$0xf]  ;;  %v2741_v52 = vor.u32 %v3491_v44, %v2740_v43 }
  0x16   :  { %v3426_v60 = vld [vmem:[%s5404_s1 + $0x13c] sm:$0xf0]  ;;  %v2478_v1 = vld [vmem:[%s5404_s1 + $0x140] sm:$0xf0]  ;;  %v3619_v47 = vld [vmem:[%s5404_s1 + $0x744] sm:$0xf0] }
  0x17   :  { %v2988_v61 = vld [vmem:[%s5404_s1 + $0x500] sm:$0xf]  ;;  %v3546_v2 = vld [vmem:[%s5404_s1 + $0x504] sm:$0xf]  ;;  %v2477_v4 = vor.u32 %v3426_v60, %v2476_v59  ;;  %1585 = vmatpush.bf16.msra.mxu1 %v3053_v57  ;;  %v2481_v6 = vor.u32 %v3418_v0, %v2478_v1  ;;  %1611 = vmatpush.bf16.msra.mxu3 %v3057_v62  ;;  %v3483_v48 = vld [vmem:[%s5404_s1 + $0x30c] sm:$0xf]  ;;  %v3253_v53 = vor.u32 %v3619_v47, %v3252_v45 }
  0x18   :  { %v3554_v63 = vld [vmem:[%s5404_s1 + $0x53c] sm:$0xf0]  ;;  %v2990_v3 = vld [vmem:[%s5404_s1 + $0x540] sm:$0xf0]  ;;  %v2742_v49 = vld [vmem:[%s5404_s1 + $0x348] sm:$0xf0] }
  0x19   :  { %v2989_v5 = vor.u32 %v3554_v63, %v2988_v61  ;;  %v2412_v7 = vld [vmem:[%s5404_s1 + $0x80] sm:$0xf]  ;;  %v2993_v10 = vor.u32 %v3546_v2, %v2990_v3  ;;  %v3402_v12 = vld [vmem:[%s5404_s1 + $0x84] sm:$0xf]  ;;  %1573 = vmatpush.bf16.msra.mxu0 %v2477_v4  ;;  %1599 = vmatpush.bf16.msra.mxu2 %v2481_v6  ;;  %v3611_v50 = vld [vmem:[%s5404_s1 + $0x70c] sm:$0xf]  ;;  %v2745_v54 = vor.u32 %v3483_v48, %v2742_v49 }
  0x1a   :  { %v3410_v8 = vld [vmem:[%s5404_s1 + $0xbc] sm:$0xf0]  ;;  %v2414_v13 = vld [vmem:[%s5404_s1 + $0xc0] sm:$0xf0]  ;;  %v3254_v51 = vld [vmem:[%s5404_s1 + $0x748] sm:$0xf0] }
  0x1b   :  { %v2924_v9 = vld [vmem:[%s5404_s1 + $0x480] sm:$0xf]  ;;  %v3530_v14 = vld [vmem:[%s5404_s1 + $0x484] sm:$0xf]  ;;  %v2413_v16 = vor.u32 %v3410_v8, %v2412_v7  ;;  %1586 = vmatpush.bf16.msra.mxu1 %v2989_v5  ;;  %v2417_v20 = vor.u32 %v3402_v12, %v2414_v13  ;;  %1612 = vmatpush.bf16.msra.mxu3 %v2993_v10  ;;  %v2676_v55 = vld [vmem:[%s5404_s1 + $0x288] sm:$0xf]  ;;  %v3257_v58 = vor.u32 %v3611_v50, %v3254_v51 }
  0x1c   :  { %v3538_v11 = vld [vmem:[%s5404_s1 + $0x4bc] sm:$0xf0]  ;;  %v2926_v15 = vld [vmem:[%s5404_s1 + $0x4c0] sm:$0xf0]  ;;  %v3475_v56 = vld [vmem:[%s5404_s1 + $0x2c4] sm:$0xf0] }
  0x1d   :  { %v2348_v17 = vld [vmem:[%s5404_s1] sm:$0xf]  ;;  %v2925_v19 = vor.u32 %v3538_v11, %v2924_v9  ;;  %v3386_v23 = vld [vmem:[%s5404_s1 + $0x4] sm:$0xf]  ;;  %v2929_v24 = vor.u32 %v3530_v14, %v2926_v15  ;;  %1574 = vmatpush.bf16.msra.mxu0 %v2413_v16  ;;  %1600 = vmatpush.bf16.msra.mxu2 %v2417_v20  ;;  %v3188_v57 = vld [vmem:[%s5404_s1 + $0x688] sm:$0xf]  ;;  %v2677_v0 = vor.u32 %v3475_v56, %v2676_v55 }
  0x1e   :  { %v3394_v18 = vld [vmem:[%s5404_s1 + $0x3c] sm:$0xf0]  ;;  %v2350_v25 = vld [vmem:[%s5404_s1 + $0x40] sm:$0xf0]  ;;  %v3603_v59 = vld [vmem:[%s5404_s1 + $0x6c4] sm:$0xf0] }
  0x1f   :  { %v2860_v21 = vld [vmem:[%s5404_s1 + $0x400] sm:$0xf]  ;;  %v3514_v26 = vld [vmem:[%s5404_s1 + $0x404] sm:$0xf]  ;;  %v2349_v31 = vor.u32 %v3394_v18, %v2348_v17  ;;  %1587 = vmatpush.bf16.msra.mxu1 %v2925_v19  ;;  %v2353_v36 = vor.u32 %v3386_v23, %v2350_v25  ;;  %1613 = vmatpush.bf16.msra.mxu3 %v2929_v24  ;;  %v3467_v60 = vld [vmem:[%s5404_s1 + $0x28c] sm:$0xf]  ;;  %v3189_v2 = vor.u32 %v3603_v59, %v3188_v57 }
  0x20   :  { %v3522_v22 = vld [vmem:[%s5404_s1 + $0x43c] sm:$0xf0]  ;;  %v2862_v27 = vld [vmem:[%s5404_s1 + $0x440] sm:$0xf0]  ;;  %v2678_v61 = vld [vmem:[%s5404_s1 + $0x2c8] sm:$0xf0] }
  0x21   :  { %v2861_v35 = vor.u32 %v3522_v22, %v2860_v21  ;;  %v2865_v39 = vor.u32 %v3514_v26, %v2862_v27  ;;  %1575 = vmatpush.bf16.msra.mxu0 %v2349_v31  ;;  %1601 = vmatpush.bf16.msra.mxu2 %v2353_v36  ;;  %v3595_v62 = vld [vmem:[%s5404_s1 + $0x68c] sm:$0xf]  ;;  %v18_v1 = vld [vmem:[%s5405_s0] sm:$0xff]  ;;  %v2681_v3 = vor.u32 %v3467_v60, %v2678_v61  ;;  %v2612_v4 = vld [vmem:[%s5404_s1 + $0x208] sm:$0xf] }
  0x22   :  { %v3190_v63 = vld [vmem:[%s5404_s1 + $0x6c8] sm:$0xf0]  ;;  %v3459_v5 = vld [vmem:[%s5404_s1 + $0x244] sm:$0xf0]  ;;  %v282_v7 = vunpack.c.l.b16 %v18_v1  ;;  %v283_v8 = vunpack.c.h.b16 %v18_v1  ;;  %v275_v56 = vld [vmem:[%s5406_s2] sm:$0xff] }
  0x23   :  { %1588 = vmatpush.bf16.msra.mxu1 %v2861_v35  ;;  %1614 = vmatpush.bf16.msra.mxu3 %v2865_v39  ;;  %v3124_v6 = vld [vmem:[%s5404_s1 + $0x608] sm:$0xf]  ;;  %v3193_v9 = vor.u32 %v3595_v62, %v3190_v63  ;;  %v3451_v11 = vld [vmem:[%s5404_s1 + $0x20c] sm:$0xf]  ;;  %v2613_v17 = vor.u32 %v3459_v5, %v2612_v4  ;;  %v3508_v4 = vld [vmem:[%s5404_s1 + $0x3cc] sm:$0xf0] }
  0x24   :  { %v3587_v10 = vld [vmem:[%s5404_s1 + $0x644] sm:$0xf0]  ;;  %v2614_v12 = vld [vmem:[%s5404_s1 + $0x248] sm:$0xf0]  ;;  %v3993_v15 = vpack.c.b16 %v282_v7, %v282_v7  ;;  %v3995_v16 = vpack.c.b16 %v283_v8, %v283_v8  ;;  %v3324_v5 = vld [vmem:[%s5404_s1 + $0x790] sm:$0xf] }
  0x25   :  { %1620 = vmatpush.bf16.msrb.mxu0 %v2805_v40  ;;  %1646 = vmatpush.bf16.msrb.mxu2 %v2809_v42  ;;  %v3579_v13 = vld [vmem:[%s5404_s1 + $0x60c] sm:$0xf]  ;;  %v3125_v18 = vor.u32 %v3587_v10, %v3124_v6  ;;  %v2617_v19 = vor.u32 %v3451_v11, %v2614_v12  ;;  %v2548_v20 = vld [vmem:[%s5404_s1 + $0x188] sm:$0xf]  ;;  %v3636_v7 = vld [vmem:[%s5404_s1 + $0x7cc] sm:$0xf0] }
  0x26   :  { %v3126_v14 = vld [vmem:[%s5404_s1 + $0x648] sm:$0xf0]  ;;  %v3443_v21 = vld [vmem:[%s5404_s1 + $0x1c4] sm:$0xf0]  ;;  %1602 = vmatmul.bf16.vlgmr.msra.gmra.mxu2 %v3993_v15  ;;  %1615 = vmatmul.bf16.vlgmr.msra.gmra.mxu3 %v3995_v16  ;;  %v3500_v8 = vld [vmem:[%s5404_s1 + $0x394] sm:$0xf] }
  0x27   :  { %1633 = vmatpush.bf16.msrb.mxu1 %v3317_v41  ;;  %1659 = vmatpush.bf16.msrb.mxu3 %v3321_v46  ;;  %v3060_v22 = vld [vmem:[%s5404_s1 + $0x588] sm:$0xf]  ;;  %v3129_v23 = vor.u32 %v3579_v13, %v3126_v14  ;;  %v3435_v25 = vld [vmem:[%s5404_s1 + $0x18c] sm:$0xf]  ;;  %v2549_v29 = vor.u32 %v3443_v21, %v2548_v20  ;;  %v3628_v12 = vld [vmem:[%s5404_s1 + $0x794] sm:$0xf] }
  0x28   :  { %v3571_v24 = vld [vmem:[%s5404_s1 + $0x5c4] sm:$0xf0]  ;;  %v2550_v26 = vld [vmem:[%s5404_s1 + $0x1c8] sm:$0xf0]  ;;  %1576 = vmatmul.bf16.vlgmr.msra.gmra.mxu0 %v3993_v15  ;;  %1589 = vmatmul.bf16.vlgmr.msra.gmra.mxu1 %v3995_v16  ;;  %v3326_v13 = vld [vmem:[%s5404_s1 + $0x7d0] sm:$0xf0] }
  0x29   :  { %1621 = vmatpush.bf16.msrb.mxu0 %v2741_v52  ;;  %1647 = vmatpush.bf16.msrb.mxu2 %v2745_v54  ;;  %v3563_v27 = vld [vmem:[%s5404_s1 + $0x58c] sm:$0xf]  ;;  %v3061_v30 = vor.u32 %v3571_v24, %v3060_v22  ;;  %v2553_v31 = vor.u32 %v3435_v25, %v2550_v26  ;;  %v2484_v32 = vld [vmem:[%s5404_s1 + $0x108] sm:$0xf]  ;;  %v2748_v20 = vld [vmem:[%s5404_s1 + $0x310] sm:$0xf] }
  0x2a   :  { %v3062_v28 = vld [vmem:[%s5404_s1 + $0x5c8] sm:$0xf0]  ;;  %v3427_v33 = vld [vmem:[%s5404_s1 + $0x144] sm:$0xf0]  ;;  %v3492_v21 = vld [vmem:[%s5404_s1 + $0x34c] sm:$0xf0] }
  0x2b   :  { %1634 = vmatpush.bf16.msrb.mxu1 %v3253_v53  ;;  %1660 = vmatpush.bf16.msrb.mxu3 %v3257_v58  ;;  %v2996_v34 = vld [vmem:[%s5404_s1 + $0x508] sm:$0xf]  ;;  %v3065_v35 = vor.u32 %v3563_v27, %v3062_v28  ;;  %v3419_v37 = vld [vmem:[%s5404_s1 + $0x10c] sm:$0xf]  ;;  %v2485_v41 = vor.u32 %v3427_v33, %v2484_v32  ;;  %v3260_v22 = vld [vmem:[%s5404_s1 + $0x710] sm:$0xf] }
  0x2c   :  { %v3555_v36 = vld [vmem:[%s5404_s1 + $0x544] sm:$0xf0]  ;;  %v2486_v38 = vld [vmem:[%s5404_s1 + $0x148] sm:$0xf0]  ;;  %v3620_v24 = vld [vmem:[%s5404_s1 + $0x74c] sm:$0xf0] }
  0x2d   :  { %1622 = vmatpush.bf16.msrb.mxu0 %v2677_v0  ;;  %1648 = vmatpush.bf16.msrb.mxu2 %v2681_v3  ;;  %v3547_v39 = vld [vmem:[%s5404_s1 + $0x50c] sm:$0xf]  ;;  %v2997_v42 = vor.u32 %v3555_v36, %v2996_v34  ;;  %v2489_v43 = vor.u32 %v3419_v37, %v2486_v38  ;;  %v2420_v44 = vld [vmem:[%s5404_s1 + $0x88] sm:$0xf]  ;;  %v2812_v3 = vld [vmem:[%s5404_s1 + $0x390] sm:$0xf] }
  0x2e   :  { %v2998_v40 = vld [vmem:[%s5404_s1 + $0x548] sm:$0xf0]  ;;  %v3411_v45 = vld [vmem:[%s5404_s1 + $0xc4] sm:$0xf0]  ;;  %v3484_v25 = vld [vmem:[%s5404_s1 + $0x314] sm:$0xf] }
  0x2f   :  { %1635 = vmatpush.bf16.msrb.mxu1 %v3189_v2  ;;  %1661 = vmatpush.bf16.msrb.mxu3 %v3193_v9  ;;  %v2932_v46 = vld [vmem:[%s5404_s1 + $0x488] sm:$0xf]  ;;  %v3001_v47 = vor.u32 %v3547_v39, %v2998_v40  ;;  %v3403_v49 = vld [vmem:[%s5404_s1 + $0x8c] sm:$0xf]  ;;  %v2421_v53 = vor.u32 %v3411_v45, %v2420_v44  ;;  %v3676_v2 = vmov 0  }
  0x30   :  { %v3539_v48 = vld [vmem:[%s5404_s1 + $0x4c4] sm:$0xf0]  ;;  %v2422_v50 = vld [vmem:[%s5404_s1 + $0xc8] sm:$0xf0]  ;;  %3643 = vset.pattern.permute.xlu0 %v3676_v2  ;;  %v2814_v9 = vld [vmem:[%s5404_s1 + $0x3d0] sm:$0xf0] }
  0x31   :  { %1623 = vmatpush.bf16.msrb.mxu0 %v2613_v17  ;;  %1649 = vmatpush.bf16.msrb.mxu2 %v2617_v19  ;;  %v3531_v51 = vld [vmem:[%s5404_s1 + $0x48c] sm:$0xf]  ;;  %v2356_v54 = vld [vmem:[%s5404_s1 + $0x8] sm:$0xf]  ;;  %v2933_v57 = vor.u32 %v3539_v48, %v2932_v46  ;;  %v2425_v58 = vor.u32 %v3403_v49, %v2422_v50  ;;  %v2813_v17 = vor.u32 %v3508_v4, %v2812_v3  ;;  %v2750_v26 = vld [vmem:[%s5404_s1 + $0x350] sm:$0xf0] }
  0x32   :  { %v2934_v52 = vld [vmem:[%s5404_s1 + $0x4c8] sm:$0xf0]  ;;  %v3395_v55 = vld [vmem:[%s5404_s1 + $0x44] sm:$0xf0]  ;;  %278 = vperm.xlu0 %3643, %v275_v56   ;;  %v2817_v19 = vor.u32 %v3500_v8, %v2814_v9  ;;  %v3612_v27 = vld [vmem:[%s5404_s1 + $0x714] sm:$0xf] }
  0x33   :  { %1636 = vmatpush.bf16.msrb.mxu1 %v3125_v18  ;;  %1662 = vmatpush.bf16.msrb.mxu3 %v3129_v23  ;;  %v2868_v59 = vld [vmem:[%s5404_s1 + $0x408] sm:$0xf]  ;;  %v3387_v61 = vld [vmem:[%s5404_s1 + $0xc] sm:$0xf]  ;;  %v2937_v62 = vor.u32 %v3531_v51, %v2934_v52  ;;  %v2357_v6 = vor.u32 %v3395_v55, %v2356_v54  ;;  %v3325_v18 = vor.u32 %v3636_v7, %v3324_v5  ;;  %v3262_v28 = vld [vmem:[%s5404_s1 + $0x750] sm:$0xf0] }
  0x34   :  { %v3523_v60 = vld [vmem:[%s5404_s1 + $0x444] sm:$0xf0]  ;;  %v2358_v63 = vld [vmem:[%s5404_s1 + $0x48] sm:$0xf0]  ;;  %v3329_v23 = vor.u32 %v3628_v12, %v3326_v13  ;;  %v2684_v32 = vld [vmem:[%s5404_s1 + $0x290] sm:$0xf] }
  0x35   :  { %1624 = vmatpush.bf16.msrb.mxu0 %v2549_v29  ;;  %1650 = vmatpush.bf16.msrb.mxu2 %v2553_v31  ;;  %v3515_v0 = vld [vmem:[%s5404_s1 + $0x40c] sm:$0xf]  ;;  %v2869_v10 = vor.u32 %v3523_v60, %v2868_v59  ;;  %v2361_v11 = vor.u32 %v3387_v61, %v2358_v63  ;;  %v2749_v29 = vor.u32 %v3492_v21, %v2748_v20  ;;  %v3476_v33 = vld [vmem:[%s5404_s1 + $0x2cc] sm:$0xf0]  ;;  %v3468_v37 = vld [vmem:[%s5404_s1 + $0x294] sm:$0xf] }
  0x36   :  { %v2870_v1 = vld [vmem:[%s5404_s1 + $0x448] sm:$0xf0]  ;;  %v2753_v31 = vor.u32 %v3484_v25, %v2750_v26  ;;  %v3196_v34 = vld [vmem:[%s5404_s1 + $0x690] sm:$0xf]  ;;  %v2686_v38 = vld [vmem:[%s5404_s1 + $0x2d0] sm:$0xf0] }
  0x37   :  { %1637 = vmatpush.bf16.msrb.mxu1 %v3061_v30  ;;  %1663 = vmatpush.bf16.msrb.mxu3 %v3065_v35  ;;  %v2873_v14 = vor.u32 %v3515_v0, %v2870_v1  ;;  %v3261_v30 = vor.u32 %v3620_v24, %v3260_v22  ;;  %v3265_v35 = vor.u32 %v3612_v27, %v3262_v28  ;;  %v3604_v36 = vld [vmem:[%s5404_s1 + $0x6cc] sm:$0xf0]  ;;  %v3596_v39 = vld [vmem:[%s5404_s1 + $0x694] sm:$0xf] }
  0x38   :  { %v3198_v40 = vld [vmem:[%s5404_s1 + $0x6d0] sm:$0xf0]  ;;  %v2620_v44 = vld [vmem:[%s5404_s1 + $0x210] sm:$0xf] }
  0x39   :  { %1625 = vmatpush.bf16.msrb.mxu0 %v2485_v41  ;;  %1651 = vmatpush.bf16.msrb.mxu2 %v2489_v43  ;;  %v2685_v41 = vor.u32 %v3476_v33, %v2684_v32  ;;  %v2689_v43 = vor.u32 %v3468_v37, %v2686_v38  ;;  %v3460_v45 = vld [vmem:[%s5404_s1 + $0x24c] sm:$0xf0]  ;;  %v3452_v49 = vld [vmem:[%s5404_s1 + $0x214] sm:$0xf] }
  0x3a   :  { %v3132_v46 = vld [vmem:[%s5404_s1 + $0x610] sm:$0xf]  ;;  %v2622_v50 = vld [vmem:[%s5404_s1 + $0x250] sm:$0xf0] }
  0x3b   :  { %1638 = vmatpush.bf16.msrb.mxu1 %v2997_v42  ;;  %1664 = vmatpush.bf16.msrb.mxu3 %v3001_v47  ;;  %v3197_v42 = vor.u32 %v3604_v36, %v3196_v34  ;;  %v3201_v47 = vor.u32 %v3596_v39, %v3198_v40  ;;  %v3588_v48 = vld [vmem:[%s5404_s1 + $0x64c] sm:$0xf0]  ;;  %v3580_v51 = vld [vmem:[%s5404_s1 + $0x614] sm:$0xf]  ;;  %v2625_v55 = vor.u32 %v3452_v49, %v2622_v50  ;;  %v2820_v39 = vld [vmem:[%s5404_s1 + $0x398] sm:$0xf] }
  0x3c   :  { %v3134_v52 = vld [vmem:[%s5404_s1 + $0x650] sm:$0xf0]  ;;  %v3133_v54 = vor.u32 %v3588_v48, %v3132_v46  ;;  %v2556_v56 = vld [vmem:[%s5404_s1 + $0x190] sm:$0xf]  ;;  %v3509_v40 = vld [vmem:[%s5404_s1 + $0x3d4] sm:$0xf0] }
  0x3d   :  { %1626 = vmatpush.bf16.msrb.mxu0 %v2421_v53  ;;  %1652 = vmatpush.bf16.msrb.mxu2 %v2425_v58  ;;  %v2621_v53 = vor.u32 %v3460_v45, %v2620_v44  ;;  %v3068_v58 = vld [vmem:[%s5404_s1 + $0x590] sm:$0xf]  ;;  %v3137_v59 = vor.u32 %v3580_v51, %v3134_v52  ;;  %v3436_v61 = vld [vmem:[%s5404_s1 + $0x194] sm:$0xf]  ;;  %v3501_v44 = vld [vmem:[%s5404_s1 + $0x39c] sm:$0xf]  ;;  %v2821_v51 = vor.u32 %v3509_v40, %v2820_v39 }
  0x3e   :  { %v3572_v60 = vld [vmem:[%s5404_s1 + $0x5cc] sm:$0xf0]  ;;  %v3564_v63 = vld [vmem:[%s5404_s1 + $0x594] sm:$0xf]  ;;  %v2822_v45 = vld [vmem:[%s5404_s1 + $0x3d8] sm:$0xf0] }
  0x3f   :  { %1639 = vmatpush.bf16.msrb.mxu1 %v2933_v57  ;;  %1665 = vmatpush.bf16.msrb.mxu3 %v2937_v62  ;;  %v3444_v57 = vld [vmem:[%s5404_s1 + $0x1cc] sm:$0xf0]  ;;  %v2558_v62 = vld [vmem:[%s5404_s1 + $0x1d0] sm:$0xf0]  ;;  %v3069_v2 = vor.u32 %v3572_v60, %v3068_v58  ;;  %v3629_v48 = vld [vmem:[%s5404_s1 + $0x79c] sm:$0xf] }
  0x40   :  { %v3070_v0 = vld [vmem:[%s5404_s1 + $0x5d0] sm:$0xf0]  ;;  %v2557_v1 = vor.u32 %v3444_v57, %v2556_v56  ;;  %v2561_v3 = vor.u32 %v3436_v61, %v2558_v62  ;;  %v2492_v4 = vld [vmem:[%s5404_s1 + $0x110] sm:$0xf]  ;;  %v3334_v49 = vld [vmem:[%s5404_s1 + $0x7d8] sm:$0xf0] }
  0x41   :  { %1627 = vmatpush.bf16.msrb.mxu0 %v2357_v6  ;;  %1653 = vmatpush.bf16.msrb.mxu2 %v2361_v11  ;;  %v3428_v5 = vld [vmem:[%s5404_s1 + $0x14c] sm:$0xf0]  ;;  %v3073_v7 = vor.u32 %v3564_v63, %v3070_v0  ;;  %v3420_v9 = vld [vmem:[%s5404_s1 + $0x114] sm:$0xf]  ;;  %v3268_v56 = vld [vmem:[%s5404_s1 + $0x718] sm:$0xf]  ;;  %v3337_v57 = vor.u32 %v3629_v48, %v3334_v49 }
  0x42   :  { %v3004_v6 = vld [vmem:[%s5404_s1 + $0x510] sm:$0xf]  ;;  %v3548_v11 = vld [vmem:[%s5404_s1 + $0x514] sm:$0xf]  ;;  %v2493_v13 = vor.u32 %v3428_v5, %v2492_v4  ;;  %v3621_v58 = vld [vmem:[%s5404_s1 + $0x754] sm:$0xf0] }
  0x43   :  { %1640 = vmatpush.bf16.msrb.mxu1 %v2869_v10  ;;  %1666 = vmatpush.bf16.msrb.mxu3 %v2873_v14  ;;  %v3556_v8 = vld [vmem:[%s5404_s1 + $0x54c] sm:$0xf0]  ;;  %v2494_v10 = vld [vmem:[%s5404_s1 + $0x150] sm:$0xf0]  ;;  %v2758_v60 = vld [vmem:[%s5404_s1 + $0x358] sm:$0xf0]  ;;  %v3269_v0 = vor.u32 %v3621_v58, %v3268_v56 }
  0x44   :  { %1654 = vmatmul.bf16.vlgmr.msrb.gmra.mxu2 %v3993_v15  ;;  %1628 = vmatmul.bf16.vlgmr.msrb.gmra.mxu0 %v3993_v15  ;;  %v3006_v12 = vld [vmem:[%s5404_s1 + $0x550] sm:$0xf0]  ;;  %v3005_v14 = vor.u32 %v3556_v8, %v3004_v6  ;;  %v2940_v20 = vld [vmem:[%s5404_s1 + $0x490] sm:$0xf]  ;;  %v3613_v61 = vld [vmem:[%s5404_s1 + $0x71c] sm:$0xf] }
  0x45   :  { %1672 = vmatpush.bf16.msra.mxu0 %v2813_v17  ;;  %1698 = vmatpush.bf16.msra.mxu2 %v2817_v19  ;;  %v2497_v17 = vor.u32 %v3420_v9, %v2494_v10  ;;  %v3412_v19 = vld [vmem:[%s5404_s1 + $0xcc] sm:$0xf0]  ;;  %v3009_v21 = vor.u32 %v3548_v11, %v3006_v12  ;;  %v2430_v24 = vld [vmem:[%s5404_s1 + $0xd0] sm:$0xf0]  ;;  %v3270_v62 = vld [vmem:[%s5404_s1 + $0x758] sm:$0xf0] }
  0x46   :  { %1667 = vmatmul.bf16.vlgmr.msrb.gmra.mxu3 %v3995_v16  ;;  %1641 = vmatmul.bf16.vlgmr.msrb.gmra.mxu1 %v3995_v16  ;;  %v3540_v22 = vld [vmem:[%s5404_s1 + $0x4cc] sm:$0xf0]  ;;  %v3532_v25 = vld [vmem:[%s5404_s1 + $0x494] sm:$0xf]  ;;  %v3204_v4 = vld [vmem:[%s5404_s1 + $0x698] sm:$0xf]  ;;  %v3273_v5 = vor.u32 %v3613_v61, %v3270_v62 }
  0x47   :  { %1685 = vmatpush.bf16.msra.mxu1 %v3325_v18  ;;  %1711 = vmatpush.bf16.msra.mxu3 %v3329_v23  ;;  %v2428_v18 = vld [vmem:[%s5404_s1 + $0x90] sm:$0xf]  ;;  %v3404_v23 = vld [vmem:[%s5404_s1 + $0x94] sm:$0xf]  ;;  %v3605_v6 = vld [vmem:[%s5404_s1 + $0x6d4] sm:$0xf0] }
  0x48   :  { %v2942_v26 = vld [vmem:[%s5404_s1 + $0x4d0] sm:$0xf0]  ;;  %v2429_v27 = vor.u32 %v3412_v19, %v2428_v18  ;;  %v2364_v28 = vld [vmem:[%s5404_s1 + $0x10] sm:$0xf]  ;;  %v2694_v8 = vld [vmem:[%s5404_s1 + $0x2d8] sm:$0xf0]  ;;  %v3205_v12 = vor.u32 %v3605_v6, %v3204_v4 }
  0x49   :  { %1673 = vmatpush.bf16.msra.mxu0 %v2749_v29  ;;  %1699 = vmatpush.bf16.msra.mxu2 %v2753_v31  ;;  %v3396_v29 = vld [vmem:[%s5404_s1 + $0x4c] sm:$0xf0]  ;;  %v2433_v31 = vor.u32 %v3404_v23, %v2430_v24  ;;  %v3388_v34 = vld [vmem:[%s5404_s1 + $0x14] sm:$0xf]  ;;  %v3597_v9 = vld [vmem:[%s5404_s1 + $0x69c] sm:$0xf] }
  0x4a   :  { %v2876_v32 = vld [vmem:[%s5404_s1 + $0x410] sm:$0xf]  ;;  %v2366_v36 = vld [vmem:[%s5404_s1 + $0x50] sm:$0xf0]  ;;  %v3206_v10 = vld [vmem:[%s5404_s1 + $0x6d8] sm:$0xf0] }
  0x4b   :  { %1686 = vmatpush.bf16.msra.mxu1 %v3261_v30  ;;  %1712 = vmatpush.bf16.msra.mxu3 %v3265_v35  ;;  %v2941_v30 = vor.u32 %v3540_v22, %v2940_v20  ;;  %v3524_v33 = vld [vmem:[%s5404_s1 + $0x44c] sm:$0xf0]  ;;  %v2945_v35 = vor.u32 %v3532_v25, %v2942_v26  ;;  %v3516_v37 = vld [vmem:[%s5404_s1 + $0x414] sm:$0xf]  ;;  %v3140_v18 = vld [vmem:[%s5404_s1 + $0x618] sm:$0xf]  ;;  %v3209_v19 = vor.u32 %v3597_v9, %v3206_v10 }
  0x4c   :  { %v2878_v38 = vld [vmem:[%s5404_s1 + $0x450] sm:$0xf0]  ;;  %v2877_v46 = vor.u32 %v3524_v33, %v2876_v32  ;;  %v3589_v20 = vld [vmem:[%s5404_s1 + $0x654] sm:$0xf0]  ;;  %v2630_v22 = vld [vmem:[%s5404_s1 + $0x258] sm:$0xf0] }
  0x4d   :  { %1674 = vmatpush.bf16.msra.mxu0 %v2685_v41  ;;  %1700 = vmatpush.bf16.msra.mxu2 %v2689_v43  ;;  %v3332_v41 = vld [vmem:[%s5404_s1 + $0x798] sm:$0xf]  ;;  %v2881_v50 = vor.u32 %v3516_v37, %v2878_v38  ;;  %v3581_v23 = vld [vmem:[%s5404_s1 + $0x61c] sm:$0xf]  ;;  %v3141_v26 = vor.u32 %v3589_v20, %v3140_v18  ;;  %v2828_v9 = vld [vmem:[%s5404_s1 + $0x3a0] sm:$0xf] }
  0x4e   :  { %v3637_v43 = vld [vmem:[%s5404_s1 + $0x7d4] sm:$0xf0]  ;;  %v3142_v24 = vld [vmem:[%s5404_s1 + $0x658] sm:$0xf0]  ;;  %v3510_v10 = vld [vmem:[%s5404_s1 + $0x3dc] sm:$0xf0] }
  0x4f   :  { %1687 = vmatpush.bf16.msra.mxu1 %v3197_v42  ;;  %1713 = vmatpush.bf16.msra.mxu3 %v3201_v47  ;;  %v2365_v42 = vor.u32 %v3396_v29, %v2364_v28  ;;  %v2369_v47 = vor.u32 %v3388_v34, %v2366_v36  ;;  %v3333_v52 = vor.u32 %v3637_v43, %v3332_v41  ;;  %v2564_v28 = vld [vmem:[%s5404_s1 + $0x198] sm:$0xf]  ;;  %v3437_v33 = vld [vmem:[%s5404_s1 + $0x19c] sm:$0xf]  ;;  %v3630_v20 = vld [vmem:[%s5404_s1 + $0x7a4] sm:$0xf] }
  0x50   :  { %v3445_v29 = vld [vmem:[%s5404_s1 + $0x1d4] sm:$0xf0]  ;;  %v2566_v34 = vld [vmem:[%s5404_s1 + $0x1d8] sm:$0xf0] }
  0x51   :  { %1675 = vmatpush.bf16.msra.mxu0 %v2621_v53  ;;  %1701 = vmatpush.bf16.msra.mxu2 %v2625_v55  ;;  %v2825_v53 = vor.u32 %v3501_v44, %v2822_v45  ;;  %v3493_v55 = vld [vmem:[%s5404_s1 + $0x354] sm:$0xf0]  ;;  %v3078_v36 = vld [vmem:[%s5404_s1 + $0x5d8] sm:$0xf0]  ;;  %v2565_v37 = vor.u32 %v3445_v29, %v2564_v28  ;;  %v2569_v39 = vor.u32 %v3437_v33, %v2566_v34  ;;  %v3276_v28 = vld [vmem:[%s5404_s1 + $0x720] sm:$0xf] }
  0x52   :  { %v3573_v32 = vld [vmem:[%s5404_s1 + $0x5d4] sm:$0xf0]  ;;  %v3421_v45 = vld [vmem:[%s5404_s1 + $0x11c] sm:$0xf]  ;;  %v3614_v33 = vld [vmem:[%s5404_s1 + $0x724] sm:$0xf] }
  0x53   :  { %1688 = vmatpush.bf16.msra.mxu1 %v3133_v54  ;;  %1714 = vmatpush.bf16.msra.mxu3 %v3137_v59  ;;  %v2756_v54 = vld [vmem:[%s5404_s1 + $0x318] sm:$0xf]  ;;  %v3485_v59 = vld [vmem:[%s5404_s1 + $0x31c] sm:$0xf]  ;;  %v3278_v34 = vld [vmem:[%s5404_s1 + $0x760] sm:$0xf0] }
  0x54   :  { %v2757_v63 = vor.u32 %v3493_v55, %v2756_v54  ;;  %v2500_v40 = vld [vmem:[%s5404_s1 + $0x118] sm:$0xf]  ;;  %v3014_v48 = vld [vmem:[%s5404_s1 + $0x558] sm:$0xf0] }
  0x55   :  { %1676 = vmatpush.bf16.msra.mxu0 %v2557_v1  ;;  %1702 = vmatpush.bf16.msra.mxu2 %v2561_v3  ;;  %v2761_v1 = vor.u32 %v3485_v59, %v2758_v60  ;;  %v3477_v3 = vld [vmem:[%s5404_s1 + $0x2d4] sm:$0xf0]  ;;  %v2438_v58 = vld [vmem:[%s5404_s1 + $0xd8] sm:$0xf0] }
  0x56   :  { %v3429_v41 = vld [vmem:[%s5404_s1 + $0x154] sm:$0xf0]  ;;  %v3533_v59 = vld [vmem:[%s5404_s1 + $0x49c] sm:$0xf] }
  0x57   :  { %1689 = vmatpush.bf16.msra.mxu1 %v3069_v2  ;;  %1715 = vmatpush.bf16.msra.mxu3 %v3073_v7  ;;  %v2692_v2 = vld [vmem:[%s5404_s1 + $0x298] sm:$0xf]  ;;  %v3469_v7 = vld [vmem:[%s5404_s1 + $0x29c] sm:$0xf]  ;;  %v2501_v49 = vor.u32 %v3429_v41, %v2500_v40  ;;  %v3212_v40 = vld [vmem:[%s5404_s1 + $0x6a0] sm:$0xf]  ;;  %v3281_v41 = vor.u32 %v3614_v33, %v3278_v34 }
  0x58   :  { %v2693_v11 = vor.u32 %v3477_v3, %v2692_v2  ;;  %v3557_v44 = vld [vmem:[%s5404_s1 + $0x554] sm:$0xf0]  ;;  %v2950_v60 = vld [vmem:[%s5404_s1 + $0x4d8] sm:$0xf0]  ;;  %v2380_v34 = vld [vmem:[%s5404_s1 + $0x20] sm:$0xf] }
  0x59   :  { %1677 = vmatpush.bf16.msra.mxu0 %v2493_v13  ;;  %1703 = vmatpush.bf16.msra.mxu2 %v2497_v17  ;;  %v2697_v13 = vor.u32 %v3469_v7, %v2694_v8  ;;  %v3461_v17 = vld [vmem:[%s5404_s1 + $0x254] sm:$0xf0]  ;;  %v3389_v4 = vld [vmem:[%s5404_s1 + $0x1c] sm:$0xf] }
  0x5a   :  { %v2948_v54 = vld [vmem:[%s5404_s1 + $0x498] sm:$0xf]  ;;  %v2374_v6 = vld [vmem:[%s5404_s1 + $0x58] sm:$0xf0] }
  0x5b   :  { %1690 = vmatpush.bf16.msra.mxu1 %v3005_v14  ;;  %1716 = vmatpush.bf16.msra.mxu3 %v3009_v21  ;;  %v2628_v14 = vld [vmem:[%s5404_s1 + $0x218] sm:$0xf]  ;;  %v3453_v21 = vld [vmem:[%s5404_s1 + $0x21c] sm:$0xf] }
  0x5c   :  { %v2629_v25 = vor.u32 %v3461_v17, %v2628_v14  ;;  %v3541_v56 = vld [vmem:[%s5404_s1 + $0x4d4] sm:$0xf0]  ;;  %v3517_v7 = vld [vmem:[%s5404_s1 + $0x41c] sm:$0xf]  ;;  %v3502_v14 = vld [vmem:[%s5404_s1 + $0x3a4] sm:$0xf] }
  0x5d   :  { %1678 = vmatpush.bf16.msra.mxu0 %v2429_v27  ;;  %1704 = vmatpush.bf16.msra.mxu2 %v2433_v31  ;;  %v2633_v27 = vor.u32 %v3453_v21, %v2630_v22  ;;  %v3145_v31 = vor.u32 %v3581_v23, %v3142_v24  ;;  %v2372_v62 = vld [vmem:[%s5404_s1 + $0x18] sm:$0xf]  ;;  %v2886_v8 = vld [vmem:[%s5404_s1 + $0x458] sm:$0xf0]  ;;  %v2830_v17 = vld [vmem:[%s5404_s1 + $0x3e0] sm:$0xf0]  ;;  %v2829_v23 = vor.u32 %v3510_v10, %v2828_v9 }
  0x5e   :  { %v2884_v2 = vld [vmem:[%s5404_s1 + $0x418] sm:$0xf]  ;;  %v3342_v21 = vld [vmem:[%s5404_s1 + $0x7e0] sm:$0xf0]  ;;  %v2889_v22 = vor.u32 %v3517_v7, %v2886_v8  ;;  %v2508_v10 = vld [vmem:[%s5404_s1 + $0x120] sm:$0xf] }
  0x5f   :  { %1691 = vmatpush.bf16.msra.mxu1 %v2941_v30  ;;  %1717 = vmatpush.bf16.msra.mxu3 %v2945_v35  ;;  %v3076_v30 = vld [vmem:[%s5404_s1 + $0x598] sm:$0xf]  ;;  %v3565_v35 = vld [vmem:[%s5404_s1 + $0x59c] sm:$0xf]  ;;  %v3345_v29 = vor.u32 %v3630_v20, %v3342_v21  ;;  %v3022_v20 = vld [vmem:[%s5404_s1 + $0x560] sm:$0xf0] }
  0x60   :  { %v3077_v38 = vor.u32 %v3573_v32, %v3076_v30  ;;  %v3081_v43 = vor.u32 %v3565_v35, %v3078_v36  ;;  %v3525_v3 = vld [vmem:[%s5404_s1 + $0x454] sm:$0xf0]  ;;  %v3622_v30 = vld [vmem:[%s5404_s1 + $0x75c] sm:$0xf0]  ;;  %v2766_v32 = vld [vmem:[%s5404_s1 + $0x360] sm:$0xf0] }
  0x61   :  { %1679 = vmatpush.bf16.msra.mxu0 %v2365_v42  ;;  %1705 = vmatpush.bf16.msra.mxu2 %v2369_v47  ;;  %v3012_v42 = vld [vmem:[%s5404_s1 + $0x518] sm:$0xf]  ;;  %v3549_v47 = vld [vmem:[%s5404_s1 + $0x51c] sm:$0xf]  ;;  %v2885_v18 = vor.u32 %v3525_v3, %v2884_v2  ;;  %v3277_v36 = vor.u32 %v3622_v30, %v3276_v28  ;;  %v3574_v2 = vld [vmem:[%s5404_s1 + $0x5dc] sm:$0xf0] }
  0x62   :  { %v3017_v55 = vor.u32 %v3549_v47, %v3014_v48  ;;  %v3438_v3 = vld [vmem:[%s5404_s1 + $0x1a4] sm:$0xf]  ;;  %v3542_v28 = vld [vmem:[%s5404_s1 + $0x4dc] sm:$0xf0] }
  0x63   :  { %1692 = vmatpush.bf16.msra.mxu1 %v2877_v46  ;;  %1718 = vmatpush.bf16.msra.mxu3 %v2881_v50  ;;  %v2502_v46 = vld [vmem:[%s5404_s1 + $0x158] sm:$0xf0]  ;;  %v3013_v50 = vor.u32 %v3557_v44, %v3012_v42  ;;  %v3606_v42 = vld [vmem:[%s5404_s1 + $0x6dc] sm:$0xf0]  ;;  %v2702_v44 = vld [vmem:[%s5404_s1 + $0x2e0] sm:$0xf0] }
  0x64   :  { %1706 = vmatmul.bf16.vlgmr.msra.gmra.mxu2 %v3993_v15  ;;  %1680 = vmatmul.bf16.vlgmr.msra.gmra.mxu0 %v3993_v15  ;;  %v3213_v48 = vor.u32 %v3606_v42, %v3212_v40  ;;  %v2446_v30 = vld [vmem:[%s5404_s1 + $0xe0] sm:$0xf0] }
  0x65   :  { %1724 = vmatpush.bf16.msrb.mxu0 %v2821_v51  ;;  %1750 = vmatpush.bf16.msrb.mxu2 %v2825_v53  ;;  %v2505_v51 = vor.u32 %v3421_v45, %v2502_v46  ;;  %v3413_v53 = vld [vmem:[%s5404_s1 + $0xd4] sm:$0xf0]  ;;  %v3598_v45 = vld [vmem:[%s5404_s1 + $0x6a4] sm:$0xf] }
  0x66   :  { %1719 = vmatmul.bf16.vlgmr.msra.gmra.mxu3 %v3995_v16  ;;  %1693 = vmatmul.bf16.vlgmr.msra.gmra.mxu1 %v3995_v16  ;;  %v3214_v46 = vld [vmem:[%s5404_s1 + $0x6e0] sm:$0xf0] }
  0x67   :  { %1737 = vmatpush.bf16.msrb.mxu1 %v3333_v52  ;;  %1763 = vmatpush.bf16.msrb.mxu3 %v3337_v57  ;;  %v2436_v52 = vld [vmem:[%s5404_s1 + $0x98] sm:$0xf]  ;;  %v3405_v57 = vld [vmem:[%s5404_s1 + $0x9c] sm:$0xf]  ;;  %v3390_v40 = vld [vmem:[%s5404_s1 + $0x24] sm:$0xf] }
  0x68   :  { %v2437_v61 = vor.u32 %v3413_v53, %v2436_v52  ;;  %v3148_v52 = vld [vmem:[%s5404_s1 + $0x620] sm:$0xf]  ;;  %v3217_v53 = vor.u32 %v3598_v45, %v3214_v46  ;;  %v2382_v42 = vld [vmem:[%s5404_s1 + $0x60] sm:$0xf0]  ;;  %v2836_v45 = vld [vmem:[%s5404_s1 + $0x3a8] sm:$0xf] }
  0x69   :  { %1725 = vmatpush.bf16.msrb.mxu0 %v2757_v63  ;;  %1751 = vmatpush.bf16.msrb.mxu2 %v2761_v1  ;;  %v3397_v63 = vld [vmem:[%s5404_s1 + $0x54] sm:$0xf0]  ;;  %v2441_v1 = vor.u32 %v3405_v57, %v2438_v58  ;;  %v3582_v57 = vld [vmem:[%s5404_s1 + $0x624] sm:$0xf]  ;;  %v3511_v46 = vld [vmem:[%s5404_s1 + $0x3e4] sm:$0xf0] }
  0x6a   :  { %v3150_v58 = vld [vmem:[%s5404_s1 + $0x660] sm:$0xf0] }
  0x6b   :  { %1738 = vmatpush.bf16.msrb.mxu1 %v3269_v0  ;;  %1764 = vmatpush.bf16.msrb.mxu3 %v3273_v5  ;;  %v2949_v0 = vor.u32 %v3541_v56, %v2948_v54  ;;  %v2953_v5 = vor.u32 %v3533_v59, %v2950_v60  ;;  %v3590_v54 = vld [vmem:[%s5404_s1 + $0x65c] sm:$0xf0]  ;;  %v2638_v56 = vld [vmem:[%s5404_s1 + $0x260] sm:$0xf0] }
  0x6c   :  { %v3149_v60 = vor.u32 %v3590_v54, %v3148_v52  ;;  %v3631_v54 = vld [vmem:[%s5404_s1 + $0x7ac] sm:$0xf] }
  0x6d   :  { %1726 = vmatpush.bf16.msrb.mxu0 %v2693_v11  ;;  %1752 = vmatpush.bf16.msrb.mxu2 %v2697_v13  ;;  %v3340_v11 = vld [vmem:[%s5404_s1 + $0x7a0] sm:$0xf] }
  0x6e   :  { %v3638_v13 = vld [vmem:[%s5404_s1 + $0x7dc] sm:$0xf0] }
  0x6f   :  { %1739 = vmatpush.bf16.msrb.mxu1 %v3205_v12  ;;  %1765 = vmatpush.bf16.msrb.mxu3 %v3209_v19  ;;  %v2373_v12 = vor.u32 %v3397_v63, %v2372_v62  ;;  %v2377_v19 = vor.u32 %v3389_v4, %v2374_v6  ;;  %v3341_v24 = vor.u32 %v3638_v13, %v3340_v11  ;;  %v2572_v62 = vld [vmem:[%s5404_s1 + $0x1a0] sm:$0xf]  ;;  %v2574_v4 = vld [vmem:[%s5404_s1 + $0x1e0] sm:$0xf0] }
  0x70   :  { %v3446_v63 = vld [vmem:[%s5404_s1 + $0x1dc] sm:$0xf0]  ;;  %v3086_v6 = vld [vmem:[%s5404_s1 + $0x5e0] sm:$0xf0]  ;;  %v2577_v9 = vor.u32 %v3438_v3, %v2574_v4  ;;  %v3615_v3 = vld [vmem:[%s5404_s1 + $0x72c] sm:$0xf] }
  0x71   :  { %1727 = vmatpush.bf16.msrb.mxu0 %v2629_v25  ;;  %1753 = vmatpush.bf16.msrb.mxu2 %v2633_v27  ;;  %v2833_v25 = vor.u32 %v3502_v14, %v2830_v17  ;;  %v3494_v27 = vld [vmem:[%s5404_s1 + $0x35c] sm:$0xf0]  ;;  %v2573_v7 = vor.u32 %v3446_v63, %v2572_v62  ;;  %v3422_v17 = vld [vmem:[%s5404_s1 + $0x124] sm:$0xf]  ;;  %v3284_v62 = vld [vmem:[%s5404_s1 + $0x728] sm:$0xf] }
  0x72   :  { %v3430_v11 = vld [vmem:[%s5404_s1 + $0x15c] sm:$0xf0]  ;;  %v3286_v4 = vld [vmem:[%s5404_s1 + $0x768] sm:$0xf0] }
  0x73   :  { %1740 = vmatpush.bf16.msrb.mxu1 %v3141_v26  ;;  %1766 = vmatpush.bf16.msrb.mxu3 %v3145_v31  ;;  %v2764_v26 = vld [vmem:[%s5404_s1 + $0x320] sm:$0xf]  ;;  %v3486_v31 = vld [vmem:[%s5404_s1 + $0x324] sm:$0xf]  ;;  %v2509_v21 = vor.u32 %v3430_v11, %v2508_v10  ;;  %v3220_v10 = vld [vmem:[%s5404_s1 + $0x6a8] sm:$0xf]  ;;  %v3289_v11 = vor.u32 %v3615_v3, %v3286_v4 }
  0x74   :  { %v2765_v35 = vor.u32 %v3494_v27, %v2764_v26  ;;  %v3558_v14 = vld [vmem:[%s5404_s1 + $0x55c] sm:$0xf0]  ;;  %v3535_v4 = vld [vmem:[%s5404_s1 + $0x4ac] sm:$0xf] }
  0x75   :  { %1728 = vmatpush.bf16.msrb.mxu0 %v2565_v37  ;;  %1754 = vmatpush.bf16.msrb.mxu2 %v2569_v39  ;;  %v2769_v37 = vor.u32 %v3486_v31, %v2766_v32  ;;  %v3478_v39 = vld [vmem:[%s5404_s1 + $0x2dc] sm:$0xf0]  ;;  %v3534_v31 = vld [vmem:[%s5404_s1 + $0x4a4] sm:$0xf] }
  0x76   :  { %v2956_v26 = vld [vmem:[%s5404_s1 + $0x4a0] sm:$0xf]  ;;  %v2958_v32 = vld [vmem:[%s5404_s1 + $0x4e0] sm:$0xf0] }
  0x77   :  { %1741 = vmatpush.bf16.msrb.mxu1 %v3077_v38  ;;  %1767 = vmatpush.bf16.msrb.mxu3 %v3081_v43  ;;  %v2700_v38 = vld [vmem:[%s5404_s1 + $0x2a0] sm:$0xf]  ;;  %v3470_v43 = vld [vmem:[%s5404_s1 + $0x2a4] sm:$0xf] }
  0x78   :  { %v2701_v47 = vor.u32 %v3478_v39, %v2700_v38  ;;  %v2892_v38 = vld [vmem:[%s5404_s1 + $0x420] sm:$0xf] }
  0x79   :  { %1729 = vmatpush.bf16.msrb.mxu0 %v2501_v49  ;;  %1755 = vmatpush.bf16.msrb.mxu2 %v2505_v51  ;;  %v2705_v49 = vor.u32 %v3470_v43, %v2702_v44  ;;  %v3462_v51 = vld [vmem:[%s5404_s1 + $0x25c] sm:$0xf0]  ;;  %v3518_v43 = vld [vmem:[%s5404_s1 + $0x424] sm:$0xf] }
  0x7a   :  { %v3526_v39 = vld [vmem:[%s5404_s1 + $0x45c] sm:$0xf0]  ;;  %v2894_v44 = vld [vmem:[%s5404_s1 + $0x460] sm:$0xf0] }
  0x7b   :  { %1742 = vmatpush.bf16.msrb.mxu1 %v3013_v50  ;;  %1768 = vmatpush.bf16.msrb.mxu3 %v3017_v55  ;;  %v2636_v50 = vld [vmem:[%s5404_s1 + $0x220] sm:$0xf]  ;;  %v3454_v55 = vld [vmem:[%s5404_s1 + $0x224] sm:$0xf]  ;;  %v2893_v52 = vor.u32 %v3526_v39, %v2892_v38  ;;  %v3575_v38 = vld [vmem:[%s5404_s1 + $0x5e4] sm:$0xf0] }
  0x7c   :  { %v2637_v59 = vor.u32 %v3462_v51, %v2636_v50  ;;  %v3503_v50 = vld [vmem:[%s5404_s1 + $0x3ac] sm:$0xf] }
  0x7d   :  { %1730 = vmatpush.bf16.msrb.mxu0 %v2437_v61  ;;  %1756 = vmatpush.bf16.msrb.mxu2 %v2441_v1  ;;  %v2641_v61 = vor.u32 %v3454_v55, %v2638_v56  ;;  %v3153_v1 = vor.u32 %v3582_v57, %v3150_v58  ;;  %v2838_v51 = vld [vmem:[%s5404_s1 + $0x3e8] sm:$0xf0]  ;;  %v2897_v56 = vor.u32 %v3518_v43, %v2894_v44 }
  0x7e   :  { %v3350_v55 = vld [vmem:[%s5404_s1 + $0x7e8] sm:$0xf0]  ;;  %v2837_v57 = vor.u32 %v3511_v46, %v2836_v45  ;;  %v2516_v46 = vld [vmem:[%s5404_s1 + $0x128] sm:$0xf] }
  0x7f   :  { %1743 = vmatpush.bf16.msrb.mxu1 %v2949_v0  ;;  %1769 = vmatpush.bf16.msrb.mxu3 %v2953_v5  ;;  %v3084_v0 = vld [vmem:[%s5404_s1 + $0x5a0] sm:$0xf]  ;;  %v3566_v5 = vld [vmem:[%s5404_s1 + $0x5a4] sm:$0xf]  ;;  %v3353_v63 = vor.u32 %v3631_v54, %v3350_v55  ;;  %v3439_v39 = vld [vmem:[%s5404_s1 + $0x1ac] sm:$0xf] }
  0x80   :  { %v3085_v8 = vor.u32 %v3574_v2, %v3084_v0  ;;  %v3089_v13 = vor.u32 %v3566_v5, %v3086_v6  ;;  %v3623_v0 = vld [vmem:[%s5404_s1 + $0x764] sm:$0xf0]  ;;  %v2774_v2 = vld [vmem:[%s5404_s1 + $0x368] sm:$0xf0] }
  0x81   :  { %1731 = vmatpush.bf16.msrb.mxu0 %v2373_v12  ;;  %1757 = vmatpush.bf16.msrb.mxu2 %v2377_v19  ;;  %v3020_v12 = vld [vmem:[%s5404_s1 + $0x520] sm:$0xf]  ;;  %v3550_v19 = vld [vmem:[%s5404_s1 + $0x524] sm:$0xf]  ;;  %v3285_v6 = vor.u32 %v3623_v0, %v3284_v62  ;;  %v3030_v54 = vld [vmem:[%s5404_s1 + $0x568] sm:$0xf0] }
  0x82   :  { %v3025_v27 = vor.u32 %v3550_v19, %v3022_v20  ;;  %v3543_v0 = vld [vmem:[%s5404_s1 + $0x4e4] sm:$0xf0] }
  0x83   :  { %1744 = vmatpush.bf16.msrb.mxu1 %v2885_v18  ;;  %1770 = vmatpush.bf16.msrb.mxu3 %v2889_v22  ;;  %v2510_v18 = vld [vmem:[%s5404_s1 + $0x160] sm:$0xf0]  ;;  %v3021_v22 = vor.u32 %v3558_v14, %v3020_v12  ;;  %v3607_v12 = vld [vmem:[%s5404_s1 + $0x6e4] sm:$0xf0]  ;;  %v2710_v14 = vld [vmem:[%s5404_s1 + $0x2e8] sm:$0xf0] }
  0x84   :  { %1758 = vmatmul.bf16.vlgmr.msrb.gmra.mxu2 %v3993_v15  ;;  %1732 = vmatmul.bf16.vlgmr.msrb.gmra.mxu0 %v3993_v15  ;;  %v3221_v20 = vor.u32 %v3607_v12, %v3220_v10  ;;  %v2900_v12 = vld [vmem:[%s5404_s1 + $0x428] sm:$0xf] }
  0x85   :  { %1776 = vmatpush.bf16.msra.mxu0 %v2829_v23  ;;  %1802 = vmatpush.bf16.msra.mxu2 %v2833_v25  ;;  %v2513_v23 = vor.u32 %v3422_v17, %v2510_v18  ;;  %v3414_v25 = vld [vmem:[%s5404_s1 + $0xdc] sm:$0xf0]  ;;  %v3599_v17 = vld [vmem:[%s5404_s1 + $0x6ac] sm:$0xf] }
  0x86   :  { %1771 = vmatmul.bf16.vlgmr.msrb.gmra.mxu3 %v3995_v16  ;;  %1745 = vmatmul.bf16.vlgmr.msrb.gmra.mxu1 %v3995_v16  ;;  %v3222_v18 = vld [vmem:[%s5404_s1 + $0x6e8] sm:$0xf0] }
  0x87   :  { %1789 = vmatpush.bf16.msra.mxu1 %v3341_v24  ;;  %1815 = vmatpush.bf16.msra.mxu3 %v3345_v29  ;;  %v2444_v24 = vld [vmem:[%s5404_s1 + $0xa0] sm:$0xf]  ;;  %v3406_v29 = vld [vmem:[%s5404_s1 + $0xa4] sm:$0xf] }
  0x88   :  { %v2445_v33 = vor.u32 %v3414_v25, %v2444_v24  ;;  %v3156_v24 = vld [vmem:[%s5404_s1 + $0x628] sm:$0xf]  ;;  %v3225_v25 = vor.u32 %v3599_v17, %v3222_v18 }
  0x89   :  { %1777 = vmatpush.bf16.msra.mxu0 %v2765_v35  ;;  %1803 = vmatpush.bf16.msra.mxu2 %v2769_v37  ;;  %v3398_v35 = vld [vmem:[%s5404_s1 + $0x5c] sm:$0xf0]  ;;  %v2449_v37 = vor.u32 %v3406_v29, %v2446_v30  ;;  %v3583_v29 = vld [vmem:[%s5404_s1 + $0x62c] sm:$0xf] }
  0x8a   :  { %v3158_v30 = vld [vmem:[%s5404_s1 + $0x668] sm:$0xf0] }
  0x8b   :  { %1790 = vmatpush.bf16.msra.mxu1 %v3277_v36  ;;  %1816 = vmatpush.bf16.msra.mxu3 %v3281_v41  ;;  %v2957_v36 = vor.u32 %v3542_v28, %v2956_v26  ;;  %v2961_v41 = vor.u32 %v3534_v31, %v2958_v32  ;;  %v3591_v26 = vld [vmem:[%s5404_s1 + $0x664] sm:$0xf0]  ;;  %v2646_v28 = vld [vmem:[%s5404_s1 + $0x268] sm:$0xf0] }
  0x8c   :  { %v3157_v32 = vor.u32 %v3591_v26, %v3156_v24  ;;  %v2844_v24 = vld [vmem:[%s5404_s1 + $0x3b0] sm:$0xf] }
  0x8d   :  { %1778 = vmatpush.bf16.msra.mxu0 %v2701_v47  ;;  %1804 = vmatpush.bf16.msra.mxu2 %v2705_v49  ;;  %v3348_v47 = vld [vmem:[%s5404_s1 + $0x7a8] sm:$0xf]  ;;  %v3356_v26 = vld [vmem:[%s5404_s1 + $0x7b0] sm:$0xf] }
  0x8e   :  { %v3639_v49 = vld [vmem:[%s5404_s1 + $0x7e4] sm:$0xf0] }
  0x8f   :  { %1791 = vmatpush.bf16.msra.mxu1 %v3213_v48  ;;  %1817 = vmatpush.bf16.msra.mxu3 %v3217_v53  ;;  %v2381_v48 = vor.u32 %v3398_v35, %v2380_v34  ;;  %v2385_v53 = vor.u32 %v3390_v40, %v2382_v42  ;;  %v3349_v58 = vor.u32 %v3639_v49, %v3348_v47  ;;  %v2580_v34 = vld [vmem:[%s5404_s1 + $0x1a8] sm:$0xf]  ;;  %v2582_v40 = vld [vmem:[%s5404_s1 + $0x1e8] sm:$0xf0] }
  0x90   :  { %v3447_v35 = vld [vmem:[%s5404_s1 + $0x1e4] sm:$0xf0]  ;;  %v3094_v42 = vld [vmem:[%s5404_s1 + $0x5e8] sm:$0xf0]  ;;  %v2585_v45 = vor.u32 %v3439_v39, %v2582_v40 }
  0x91   :  { %1779 = vmatpush.bf16.msra.mxu0 %v2637_v59  ;;  %1805 = vmatpush.bf16.msra.mxu2 %v2641_v61  ;;  %v2841_v59 = vor.u32 %v3503_v50, %v2838_v51  ;;  %v3495_v61 = vld [vmem:[%s5404_s1 + $0x364] sm:$0xf0]  ;;  %v2581_v43 = vor.u32 %v3447_v35, %v2580_v34  ;;  %v3423_v51 = vld [vmem:[%s5404_s1 + $0x12c] sm:$0xf]  ;;  %v3632_v34 = vld [vmem:[%s5404_s1 + $0x7b4] sm:$0xf] }
  0x92   :  { %v3431_v47 = vld [vmem:[%s5404_s1 + $0x164] sm:$0xf0]  ;;  %v3358_v35 = vld [vmem:[%s5404_s1 + $0x7f0] sm:$0xf0] }
  0x93   :  { %1792 = vmatpush.bf16.msra.mxu1 %v3149_v60  ;;  %1818 = vmatpush.bf16.msra.mxu3 %v3153_v1  ;;  %v2772_v60 = vld [vmem:[%s5404_s1 + $0x328] sm:$0xf]  ;;  %v3487_v1 = vld [vmem:[%s5404_s1 + $0x32c] sm:$0xf]  ;;  %v2517_v55 = vor.u32 %v3431_v47, %v2516_v46  ;;  %v3488_v46 = vld [vmem:[%s5404_s1 + $0x334] sm:$0xf] }
  0x94   :  { %v2773_v5 = vor.u32 %v3495_v61, %v2772_v60  ;;  %v3559_v50 = vld [vmem:[%s5404_s1 + $0x564] sm:$0xf0]  ;;  %v2782_v47 = vld [vmem:[%s5404_s1 + $0x370] sm:$0xf0] }
  0x95   :  { %1780 = vmatpush.bf16.msra.mxu0 %v2573_v7  ;;  %1806 = vmatpush.bf16.msra.mxu2 %v2577_v9  ;;  %v2777_v7 = vor.u32 %v3487_v1, %v2774_v2  ;;  %v3479_v9 = vld [vmem:[%s5404_s1 + $0x2e4] sm:$0xf0]  ;;  %v3407_v1 = vld [vmem:[%s5404_s1 + $0xac] sm:$0xf] }
  0x96   :  { %v3415_v60 = vld [vmem:[%s5404_s1 + $0xe4] sm:$0xf0]  ;;  %v2454_v2 = vld [vmem:[%s5404_s1 + $0xe8] sm:$0xf0] }
  0x97   :  { %1793 = vmatpush.bf16.msra.mxu1 %v3085_v8  ;;  %1819 = vmatpush.bf16.msra.mxu3 %v3089_v13  ;;  %v2708_v8 = vld [vmem:[%s5404_s1 + $0x2a8] sm:$0xf]  ;;  %v3471_v13 = vld [vmem:[%s5404_s1 + $0x2ac] sm:$0xf] }
  0x98   :  { %v2709_v19 = vor.u32 %v3479_v9, %v2708_v8  ;;  %v2964_v61 = vld [vmem:[%s5404_s1 + $0x4a8] sm:$0xf] }
  0x99   :  { %1781 = vmatpush.bf16.msra.mxu0 %v2509_v21  ;;  %1807 = vmatpush.bf16.msra.mxu2 %v2513_v23  ;;  %v2713_v21 = vor.u32 %v3471_v13, %v2710_v14  ;;  %v3463_v23 = vld [vmem:[%s5404_s1 + $0x264] sm:$0xf0]  ;;  %v2965_v10 = vor.u32 %v3543_v0, %v2964_v61  ;;  %v3391_v14 = vld [vmem:[%s5404_s1 + $0x2c] sm:$0xf]  ;;  %v2718_v61 = vld [vmem:[%s5404_s1 + $0x2f0] sm:$0xf0] }
  0x9a   :  { %v2388_v8 = vld [vmem:[%s5404_s1 + $0x28] sm:$0xf] }
  0x9b   :  { %1794 = vmatpush.bf16.msra.mxu1 %v3021_v22  ;;  %1820 = vmatpush.bf16.msra.mxu3 %v3025_v27  ;;  %v2644_v22 = vld [vmem:[%s5404_s1 + $0x228] sm:$0xf]  ;;  %v3455_v27 = vld [vmem:[%s5404_s1 + $0x22c] sm:$0xf] }
  0x9c   :  { %v2645_v31 = vor.u32 %v3463_v23, %v2644_v22  ;;  %v3399_v9 = vld [vmem:[%s5404_s1 + $0x64] sm:$0xf0]  ;;  %v2902_v22 = vld [vmem:[%s5404_s1 + $0x468] sm:$0xf0] }
  0x9d   :  { %1782 = vmatpush.bf16.msra.mxu0 %v2445_v33  ;;  %1808 = vmatpush.bf16.msra.mxu2 %v2449_v37  ;;  %v2649_v33 = vor.u32 %v3455_v27, %v2646_v28  ;;  %v3161_v37 = vor.u32 %v3583_v29, %v3158_v30  ;;  %v3527_v13 = vld [vmem:[%s5404_s1 + $0x464] sm:$0xf0]  ;;  %v2389_v27 = vor.u32 %v3399_v9, %v2388_v8  ;;  %v3640_v28 = vld [vmem:[%s5404_s1 + $0x7ec] sm:$0xf0]  ;;  %v3504_v29 = vld [vmem:[%s5404_s1 + $0x3b4] sm:$0xf] }
  0x9e   :  { %v2846_v30 = vld [vmem:[%s5404_s1 + $0x3f0] sm:$0xf0]  ;;  %v3357_v39 = vor.u32 %v3640_v28, %v3356_v26  ;;  %v3592_v8 = vld [vmem:[%s5404_s1 + $0x66c] sm:$0xf0] }
  0x9f   :  { %1795 = vmatpush.bf16.msra.mxu1 %v2957_v36  ;;  %1821 = vmatpush.bf16.msra.mxu3 %v2961_v41  ;;  %v3092_v36 = vld [vmem:[%s5404_s1 + $0x5a8] sm:$0xf]  ;;  %v3567_v41 = vld [vmem:[%s5404_s1 + $0x5ac] sm:$0xf]  ;;  %v2849_v40 = vor.u32 %v3504_v29, %v2846_v30  ;;  %v3456_v9 = vld [vmem:[%s5404_s1 + $0x234] sm:$0xf] }
  0xa0   :  { %v3093_v44 = vor.u32 %v3575_v38, %v3092_v36  ;;  %v3097_v49 = vor.u32 %v3567_v41, %v3094_v42  ;;  %v2780_v41 = vld [vmem:[%s5404_s1 + $0x330] sm:$0xf]  ;;  %v3440_v28 = vld [vmem:[%s5404_s1 + $0x1b4] sm:$0xf] }
  0xa1   :  { %1783 = vmatpush.bf16.msra.mxu0 %v2381_v48  ;;  %1809 = vmatpush.bf16.msra.mxu2 %v2385_v53  ;;  %v3028_v48 = vld [vmem:[%s5404_s1 + $0x528] sm:$0xf]  ;;  %v3551_v53 = vld [vmem:[%s5404_s1 + $0x52c] sm:$0xf]  ;;  %v3496_v42 = vld [vmem:[%s5404_s1 + $0x36c] sm:$0xf0] }
  0xa2   :  { %v2590_v29 = vld [vmem:[%s5404_s1 + $0x1f0] sm:$0xf0] }
  0xa3   :  { %1796 = vmatpush.bf16.msra.mxu1 %v2893_v52  ;;  %1822 = vmatpush.bf16.msra.mxu3 %v2897_v56  ;;  %v2518_v52 = vld [vmem:[%s5404_s1 + $0x168] sm:$0xf0]  ;;  %v3568_v30 = vld [vmem:[%s5404_s1 + $0x5b4] sm:$0xf] }
  0xa4   :  { %1810 = vmatmul.bf16.vlgmr.msra.gmra.mxu2 %v3993_v15  ;;  %1784 = vmatmul.bf16.vlgmr.msra.gmra.mxu0 %v3993_v15  ;;  %v4854_v3 = vpop.permute.xlu0 %278 }
  0xa5   :  { %1828 = vmatpush.bf16.msrb.mxu0 %v2837_v57  ;;  %1854 = vmatpush.bf16.msrb.mxu2 %v2841_v59  ;;  %v1577_v56 = vpop.f32.mrf.mxu0  ;;  %v3029_v57 = vor.u32 %v3559_v50, %v3028_v48  ;;  %v2452_v59 = vld [vmem:[%s5404_s1 + $0xa8] sm:$0xf]  ;;  %v1590_v62 = vpop.f32.mrf.mxu1  ;;  %v3616_v48 = vld [vmem:[%s5404_s1 + $0x734] sm:$0xf] }
  0xa6   :  { %1823 = vmatmul.bf16.vlgmr.msra.gmra.mxu3 %v3995_v16  ;;  %1797 = vmatmul.bf16.vlgmr.msra.gmra.mxu1 %v3995_v16 }
  0xa7   :  { %1841 = vmatpush.bf16.msrb.mxu1 %v3349_v58  ;;  %1867 = vmatpush.bf16.msrb.mxu3 %v3353_v63  ;;  %v2521_v58 = vor.u32 %v3423_v51, %v2518_v52  ;;  %v3033_v63 = vor.u32 %v3551_v53, %v3030_v54  ;;  %v2781_v51 = vor.u32 %v3496_v42, %v2780_v41  ;;  %v3424_v41 = vld [vmem:[%s5404_s1 + $0x134] sm:$0xf] }
  0xa8   :  { %v2785_v54 = vor.u32 %v3488_v46, %v2782_v47  ;;  %v2526_v42 = vld [vmem:[%s5404_s1 + $0x170] sm:$0xf0] }
  0xa9   :  { %1829 = vmatpush.bf16.msrb.mxu0 %v2773_v5  ;;  %1855 = vmatpush.bf16.msrb.mxu2 %v2777_v7  ;;  %v2966_v5 = vld [vmem:[%s5404_s1 + $0x4e8] sm:$0xf0]  ;;  %v2453_v7 = vor.u32 %v3415_v60, %v2452_v59  ;;  %v4878_v17 = vpop.f32.mrf.mxu2  ;;  %v4891_v23 = vpop.f32.mrf.mxu3  ;;  %v3608_v59 = vld [vmem:[%s5404_s1 + $0x6ec] sm:$0xf0]  ;;  %v3472_v60 = vld [vmem:[%s5404_s1 + $0x2b4] sm:$0xf] }
  0xab   :  { %1842 = vmatpush.bf16.msrb.mxu1 %v3285_v6  ;;  %1868 = vmatpush.bf16.msrb.mxu3 %v3289_v11  ;;  %v1578_v6 = vadd.f32 %v1577_v56, %v4854_v3  ;;  %v2457_v11 = vor.u32 %v3407_v1, %v2454_v2  ;;  %v3480_v56 = vld [vmem:[%s5404_s1 + $0x2ec] sm:$0xf0]  ;;  %v2721_v2 = vor.u32 %v3472_v60, %v2718_v61 }
  0xac   :  { %v2396_v61 = vld [vmem:[%s5404_s1 + $0x30] sm:$0xf] }
  0xad   :  { %1830 = vmatpush.bf16.msrb.mxu0 %v2709_v19  ;;  %1856 = vmatpush.bf16.msrb.mxu2 %v2713_v21  ;;  %v4880_v18 = vadd.f32 %v1590_v62, %v1578_v6  ;;  %v2969_v19 = vor.u32 %v3535_v4, %v2966_v5  ;;  %v3519_v21 = vld [vmem:[%s5404_s1 + $0x42c] sm:$0xf]  ;;  %v1592_v36 = vpop.f32.mrf.mxu1  ;;  %v3600_v62 = vld [vmem:[%s5404_s1 + $0x6b4] sm:$0xf]  ;;  %v2652_v4 = vld [vmem:[%s5404_s1 + $0x230] sm:$0xf] }
  0xae   :  { %v3464_v5 = vld [vmem:[%s5404_s1 + $0x26c] sm:$0xf0] }
  0xaf   :  { %1843 = vmatpush.bf16.msrb.mxu1 %v3221_v20  ;;  %1869 = vmatpush.bf16.msrb.mxu3 %v3225_v25  ;;  %v2390_v20 = vld [vmem:[%s5404_s1 + $0x68] sm:$0xf0]  ;;  %v3512_v25 = vld [vmem:[%s5404_s1 + $0x3ec] sm:$0xf0] }
  0xb0   :  { %v2845_v38 = vor.u32 %v3512_v25, %v2844_v24  ;;  %v3164_v6 = vld [vmem:[%s5404_s1 + $0x630] sm:$0xf] }
  0xb1   :  { %1831 = vmatpush.bf16.msrb.mxu0 %v2645_v31  ;;  %1857 = vmatpush.bf16.msrb.mxu2 %v2649_v33  ;;  %v1579_v31 = vpop.f32.mrf.mxu0  ;;  %v2393_v33 = vor.u32 %v3391_v14, %v2390_v20  ;;  %v1605_v50 = vpop.f32.mrf.mxu2  ;;  %v3100_v24 = vld [vmem:[%s5404_s1 + $0x5b0] sm:$0xf] }
  0xb2   :  { %v1618_v52 = vpop.f32.mrf.mxu3  ;;  %v3102_v31 = vld [vmem:[%s5404_s1 + $0x5f0] sm:$0xf0]  ;;  %v3432_v36 = vld [vmem:[%s5404_s1 + $0x16c] sm:$0xf0] }
  0xb3   :  { %1844 = vmatpush.bf16.msrb.mxu1 %v3157_v32  ;;  %1870 = vmatpush.bf16.msrb.mxu3 %v3161_v37  ;;  %v2901_v32 = vor.u32 %v3527_v13, %v2900_v12  ;;  %v2905_v37 = vor.u32 %v3519_v21, %v2902_v22  ;;  %v3166_v12 = vld [vmem:[%s5404_s1 + $0x670] sm:$0xf0]  ;;  %v2653_v13 = vor.u32 %v3464_v5, %v2652_v4  ;;  %v2588_v21 = vld [vmem:[%s5404_s1 + $0x1b0] sm:$0xf] }
  0xb4   :  { %v3448_v22 = vld [vmem:[%s5404_s1 + $0x1ec] sm:$0xf0]  ;;  %v3392_v4 = vld [vmem:[%s5404_s1 + $0x34] sm:$0xf] }
  0xb5   :  { %1832 = vmatpush.bf16.msrb.mxu0 %v2581_v43  ;;  %1858 = vmatpush.bf16.msrb.mxu2 %v2585_v45  ;;  %v3292_v43 = vld [vmem:[%s5404_s1 + $0x730] sm:$0xf] }
  0xb6   :  { %v3624_v45 = vld [vmem:[%s5404_s1 + $0x76c] sm:$0xf0] }
  0xb7   :  { %1845 = vmatpush.bf16.msrb.mxu1 %v3093_v44  ;;  %1871 = vmatpush.bf16.msrb.mxu3 %v3097_v49  ;;  %v3361_v44 = vor.u32 %v3632_v34, %v3358_v35  ;;  %v3294_v49 = vld [vmem:[%s5404_s1 + $0x770] sm:$0xf0]  ;;  %v3293_v53 = vor.u32 %v3624_v45, %v3292_v43  ;;  %v2593_v34 = vor.u32 %v3440_v28, %v2590_v29  ;;  %v2524_v35 = vld [vmem:[%s5404_s1 + $0x130] sm:$0xf]  ;;  %v3366_v28 = vld [vmem:[%s5404_s1 + $0x7f8] sm:$0xf0] }
  0xb8   :  { %v3038_v45 = vld [vmem:[%s5404_s1 + $0x570] sm:$0xf0]  ;;  %v2525_v46 = vor.u32 %v3432_v36, %v2524_v35  ;;  %v2460_v50 = vld [vmem:[%s5404_s1 + $0xb0] sm:$0xf]  ;;  %v3300_v35 = vld [vmem:[%s5404_s1 + $0x738] sm:$0xf] }
  0xb9   :  { %1833 = vmatpush.bf16.msrb.mxu0 %v2517_v55  ;;  %1859 = vmatpush.bf16.msrb.mxu2 %v2521_v58  ;;  %v2716_v55 = vld [vmem:[%s5404_s1 + $0x2b0] sm:$0xf]  ;;  %v3297_v58 = vor.u32 %v3616_v48, %v3294_v49  ;;  %v2529_v49 = vor.u32 %v3424_v41, %v2526_v42  ;;  %v3617_v41 = vld [vmem:[%s5404_s1 + $0x73c] sm:$0xf] }
  0xba   :  { %v2717_v0 = vor.u32 %v3480_v56, %v2716_v55  ;;  %v2972_v52 = vld [vmem:[%s5404_s1 + $0x4b0] sm:$0xf]  ;;  %v3408_v56 = vld [vmem:[%s5404_s1 + $0xb4] sm:$0xf]  ;;  %v3302_v42 = vld [vmem:[%s5404_s1 + $0x778] sm:$0xf0] }
  0xbb   :  { %1846 = vmatpush.bf16.msrb.mxu1 %v3029_v57  ;;  %1872 = vmatpush.bf16.msrb.mxu3 %v3033_v63  ;;  %v3228_v57 = vld [vmem:[%s5404_s1 + $0x6b0] sm:$0xf]  ;;  %v3230_v63 = vld [vmem:[%s5404_s1 + $0x6f0] sm:$0xf0] }
  0xbc   :  { %v3229_v1 = vor.u32 %v3608_v59, %v3228_v57  ;;  %v3544_v55 = vld [vmem:[%s5404_s1 + $0x4ec] sm:$0xf0]  ;;  %v2462_v57 = vld [vmem:[%s5404_s1 + $0xf0] sm:$0xf0] }
  0xbd   :  { %1834 = vmatpush.bf16.msrb.mxu0 %v2453_v7  ;;  %1860 = vmatpush.bf16.msrb.mxu2 %v2457_v11  ;;  %v3233_v7 = vor.u32 %v3600_v62, %v3230_v63  ;;  %v3584_v11 = vld [vmem:[%s5404_s1 + $0x634] sm:$0xf]  ;;  %v3400_v62 = vld [vmem:[%s5404_s1 + $0x6c] sm:$0xf0]  ;;  %v2973_v63 = vor.u32 %v3544_v55, %v2972_v52  ;;  %v3473_v52 = vld [vmem:[%s5404_s1 + $0x2bc] sm:$0xf] }
  0xbe   :  { %v3169_v26 = vor.u32 %v3584_v11, %v3166_v12  ;;  %v2974_v59 = vld [vmem:[%s5404_s1 + $0x4f0] sm:$0xf0]  ;;  %v2852_v11 = vld [vmem:[%s5404_s1 + $0x3b8] sm:$0xf]  ;;  %v3238_v55 = vld [vmem:[%s5404_s1 + $0x6f8] sm:$0xf0] }
  0xbf   :  { %1847 = vmatpush.bf16.msrb.mxu1 %v2965_v10  ;;  %1873 = vmatpush.bf16.msrb.mxu3 %v2969_v19  ;;  %v2654_v10 = vld [vmem:[%s5404_s1 + $0x270] sm:$0xf0]  ;;  %v3165_v19 = vor.u32 %v3592_v8, %v3164_v6  ;;  %v3513_v12 = vld [vmem:[%s5404_s1 + $0x3f4] sm:$0xf0] }
  0xc0   :  { %v2657_v20 = vor.u32 %v3456_v9, %v2654_v10  ;;  %v3520_v8 = vld [vmem:[%s5404_s1 + $0x434] sm:$0xf] }
  0xc1   :  { %1835 = vmatpush.bf16.msrb.mxu0 %v2389_v27  ;;  %1861 = vmatpush.bf16.msrb.mxu2 %v2393_v33  ;;  %v4993_v14 = vpop.f32.mrf.mxu0  ;;  %v3576_v27 = vld [vmem:[%s5404_s1 + $0x5ec] sm:$0xf0]  ;;  %v2910_v9 = vld [vmem:[%s5404_s1 + $0x470] sm:$0xf0] }
  0xc2   :  { %v3101_v33 = vor.u32 %v3576_v27, %v3100_v24  ;;  %v3633_v27 = vld [vmem:[%s5404_s1 + $0x7bc] sm:$0xf]  ;;  %v2913_v29 = vor.u32 %v3520_v8, %v2910_v9  ;;  %v2596_v9 = vld [vmem:[%s5404_s1 + $0x1b8] sm:$0xf] }
  0xc3   :  { %1848 = vmatpush.bf16.msrb.mxu1 %v2901_v32  ;;  %1874 = vmatpush.bf16.msrb.mxu3 %v2905_v37  ;;  %v5004_v25 = vpop.f32.mrf.mxu1  ;;  %v2589_v32 = vor.u32 %v3448_v22, %v2588_v21  ;;  %v3036_v37 = vld [vmem:[%s5404_s1 + $0x530] sm:$0xf]  ;;  %v3505_v21 = vld [vmem:[%s5404_s1 + $0x3bc] sm:$0xf]  ;;  %v3369_v36 = vor.u32 %v3633_v27, %v3366_v28  ;;  %v1604_v28 = vadd.f32 %v4878_v17, %v4854_v3  ;;  %v3561_v17 = vld [vmem:[%s5404_s1 + $0x574] sm:$0xf0] }
  0xc4   :  { %1862 = vmatmul.bf16.vlgmr.msrb.gmra.mxu2 %v3993_v15  ;;  %1836 = vmatmul.bf16.vlgmr.msrb.gmra.mxu0 %v3993_v15  ;;  %v2854_v22 = vld [vmem:[%s5404_s1 + $0x3f8] sm:$0xf0] }
  0xc5   :  { %1880 = vmatpush.bf16.msra.mxu0 %v2845_v38  ;;  %1906 = vmatpush.bf16.msra.mxu2 %v2849_v40  ;;  %v3560_v40 = vld [vmem:[%s5404_s1 + $0x56c] sm:$0xf0] }
  0xc6   :  { %1875 = vmatmul.bf16.vlgmr.msrb.gmra.mxu3 %v3995_v16  ;;  %1849 = vmatmul.bf16.vlgmr.msrb.gmra.mxu1 %v3995_v16  ;;  %v3037_v48 = vor.u32 %v3560_v40, %v3036_v37  ;;  %v3625_v37 = vld [vmem:[%s5404_s1 + $0x774] sm:$0xf0]  ;;  %v2790_v40 = vld [vmem:[%s5404_s1 + $0x378] sm:$0xf0] }
  0xc7   :  { %1893 = vmatpush.bf16.msra.mxu1 %v3357_v39  ;;  %1919 = vmatpush.bf16.msra.mxu3 %v3361_v44  ;;  %v5030_v38 = vpop.f32.mrf.mxu2  ;;  %v3105_v39 = vor.u32 %v3568_v30, %v3102_v31  ;;  %v3552_v44 = vld [vmem:[%s5404_s1 + $0x534] sm:$0xf]  ;;  %v2853_v30 = vor.u32 %v3513_v12, %v2852_v11  ;;  %v3108_v11 = vld [vmem:[%s5404_s1 + $0x5b8] sm:$0xf] }
  0xc9   :  { %1881 = vmatpush.bf16.msra.mxu0 %v2781_v51  ;;  %1907 = vmatpush.bf16.msra.mxu2 %v2785_v54  ;;  %v5041_v43 = vpop.f32.mrf.mxu3  ;;  %v1631_v47 = vpop.f32.mrf.mxu0  ;;  %v3416_v51 = vld [vmem:[%s5404_s1 + $0xec] sm:$0xf0]  ;;  %v3041_v54 = vor.u32 %v3552_v44, %v3038_v45  ;;  %v3301_v45 = vor.u32 %v3625_v37, %v3300_v35  ;;  %v3425_v35 = vld [vmem:[%s5404_s1 + $0x13c] sm:$0xf] }
  0xca   :  { %v2461_v60 = vor.u32 %v3416_v51, %v2460_v50  ;;  %v2724_v47 = vld [vmem:[%s5404_s1 + $0x2b8] sm:$0xf]  ;;  %v3305_v50 = vor.u32 %v3617_v41, %v3302_v42  ;;  %v3046_v41 = vld [vmem:[%s5404_s1 + $0x578] sm:$0xf0] }
  0xcb   :  { %1894 = vmatpush.bf16.msra.mxu1 %v3293_v53  ;;  %1920 = vmatpush.bf16.msra.mxu3 %v3297_v58  ;;  %v1644_v53 = vpop.f32.mrf.mxu1  ;;  %v3536_v58 = vld [vmem:[%s5404_s1 + $0x4b4] sm:$0xf]  ;;  %v3609_v51 = vld [vmem:[%s5404_s1 + $0x6f4] sm:$0xf0] }
  0xcc   :  { %v2977_v6 = vor.u32 %v3536_v58, %v2974_v59  ;;  %v2726_v53 = vld [vmem:[%s5404_s1 + $0x2f8] sm:$0xf0]  ;;  %v2660_v59 = vld [vmem:[%s5404_s1 + $0x238] sm:$0xf] }
  0xcd   :  { %1882 = vmatpush.bf16.msra.mxu0 %v2717_v0  ;;  %1908 = vmatpush.bf16.msra.mxu2 %v2721_v2  ;;  %v2465_v0 = vor.u32 %v3408_v56, %v2462_v57  ;;  %v3528_v2 = vld [vmem:[%s5404_s1 + $0x46c] sm:$0xf0]  ;;  %v2729_v58 = vor.u32 %v3473_v52, %v2726_v53  ;;  %v3545_v53 = vld [vmem:[%s5404_s1 + $0x4f4] sm:$0xf0] }
  0xcf   :  { %1895 = vmatpush.bf16.msra.mxu1 %v3229_v1  ;;  %1921 = vmatpush.bf16.msra.mxu3 %v3233_v7  ;;  %v2908_v1 = vld [vmem:[%s5404_s1 + $0x430] sm:$0xf]  ;;  %v1657_v5 = vpop.f32.mrf.mxu2  ;;  %v2398_v7 = vld [vmem:[%s5404_s1 + $0x70] sm:$0xf0] }
  0xd0   :  { %v2909_v24 = vor.u32 %v3528_v2, %v2908_v1  ;;  %v2662_v1 = vld [vmem:[%s5404_s1 + $0x278] sm:$0xf0] }
  0xd1   :  { %1883 = vmatpush.bf16.msra.mxu0 %v2653_v13  ;;  %1909 = vmatpush.bf16.msra.mxu2 %v2657_v20  ;;  %v1670_v10 = vpop.f32.mrf.mxu3  ;;  %v3364_v13 = vld [vmem:[%s5404_s1 + $0x7b8] sm:$0xf]  ;;  %v3585_v2 = vld [vmem:[%s5404_s1 + $0x63c] sm:$0xf] }
  0xd2   :  { %v3641_v20 = vld [vmem:[%s5404_s1 + $0x7f4] sm:$0xf0] }
  0xd3   :  { %1896 = vmatpush.bf16.msra.mxu1 %v3165_v19  ;;  %1922 = vmatpush.bf16.msra.mxu3 %v3169_v26  ;;  %v2397_v19 = vor.u32 %v3400_v62, %v2396_v61  ;;  %v2401_v26 = vor.u32 %v3392_v4, %v2398_v7  ;;  %v3365_v31 = vor.u32 %v3641_v20, %v3364_v13  ;;  %v3172_v61 = vld [vmem:[%s5404_s1 + $0x638] sm:$0xf]  ;;  %v3174_v4 = vld [vmem:[%s5404_s1 + $0x678] sm:$0xf0] }
  0xd4   :  { %v3449_v10 = vld [vmem:[%s5404_s1 + $0x1f4] sm:$0xf0]  ;;  %v3177_v13 = vor.u32 %v3585_v2, %v3174_v4  ;;  %v3441_v20 = vld [vmem:[%s5404_s1 + $0x1bc] sm:$0xf] }
  0xd5   :  { %1884 = vmatpush.bf16.msra.mxu0 %v2589_v32  ;;  %1910 = vmatpush.bf16.msra.mxu2 %v2593_v34  ;;  %v2857_v32 = vor.u32 %v3505_v21, %v2854_v22  ;;  %v3497_v34 = vld [vmem:[%s5404_s1 + $0x374] sm:$0xf0]  ;;  %v2598_v21 = vld [vmem:[%s5404_s1 + $0x1f8] sm:$0xf0]  ;;  %v2597_v27 = vor.u32 %v3449_v10, %v2596_v9 }
  0xd6   :  { %v3569_v22 = vld [vmem:[%s5404_s1 + $0x5bc] sm:$0xf]  ;;  %v2404_v2 = vld [vmem:[%s5404_s1 + $0x38] sm:$0xf] }
  0xd7   :  { %1897 = vmatpush.bf16.msra.mxu1 %v3101_v33  ;;  %1923 = vmatpush.bf16.msra.mxu3 %v3105_v39  ;;  %v2788_v33 = vld [vmem:[%s5404_s1 + $0x338] sm:$0xf]  ;;  %v3489_v39 = vld [vmem:[%s5404_s1 + $0x33c] sm:$0xf] }
  0xd8   :  { %v2789_v44 = vor.u32 %v3497_v34, %v2788_v33  ;;  %v3401_v4 = vld [vmem:[%s5404_s1 + $0x74] sm:$0xf0]  ;;  %v2406_v9 = vld [vmem:[%s5404_s1 + $0x78] sm:$0xf0] }
  0xd9   :  { %1885 = vmatpush.bf16.msra.mxu0 %v2525_v46  ;;  %1911 = vmatpush.bf16.msra.mxu2 %v2529_v49  ;;  %v2793_v46 = vor.u32 %v3489_v39, %v2790_v40  ;;  %v3236_v49 = vld [vmem:[%s5404_s1 + $0x6b8] sm:$0xf]  ;;  %v1656_v39 = vadd.f32 %v5030_v38, %v4854_v3  ;;  %v3553_v40 = vld [vmem:[%s5404_s1 + $0x53c] sm:$0xf] }
  0xda   :  { %v3237_v57 = vor.u32 %v3609_v51, %v3236_v49  ;;  %v3417_v51 = vld [vmem:[%s5404_s1 + $0xf4] sm:$0xf0]  ;;  %v3049_v52 = vor.u32 %v3553_v40, %v3046_v41 }
  0xdb   :  { %1898 = vmatpush.bf16.msra.mxu1 %v3037_v48  ;;  %1924 = vmatpush.bf16.msra.mxu3 %v3041_v54  ;;  %v3481_v48 = vld [vmem:[%s5404_s1 + $0x2f4] sm:$0xf0]  ;;  %v3601_v54 = vld [vmem:[%s5404_s1 + $0x6bc] sm:$0xf] }
  0xdc   :  { %v2725_v56 = vor.u32 %v3481_v48, %v2724_v47  ;;  %v3241_v62 = vor.u32 %v3601_v54, %v3238_v55  ;;  %v3409_v54 = vld [vmem:[%s5404_s1 + $0xbc] sm:$0xf] }
  0xdd   :  { %1886 = vmatpush.bf16.msra.mxu0 %v2461_v60  ;;  %1912 = vmatpush.bf16.msra.mxu2 %v2465_v0  ;;  %v3465_v60 = vld [vmem:[%s5404_s1 + $0x274] sm:$0xf0]  ;;  %v3457_v0 = vld [vmem:[%s5404_s1 + $0x23c] sm:$0xf] }
  0xde   :  { %v2661_v5 = vor.u32 %v3465_v60, %v2660_v59  ;;  %v2665_v8 = vor.u32 %v3457_v0, %v2662_v1  ;;  %v2470_v55 = vld [vmem:[%s5404_s1 + $0xf8] sm:$0xf0]  ;;  %v1984_v59 = vmax.f32 %v4880_v18, 0.0  ;;  %v2916_v18 = vld [vmem:[%s5404_s1 + $0x438] sm:$0xf] }
  0xdf   :  { %1899 = vmatpush.bf16.msra.mxu1 %v2973_v63  ;;  %1925 = vmatpush.bf16.msra.mxu3 %v2977_v6  ;;  %v3593_v63 = vld [vmem:[%s5404_s1 + $0x674] sm:$0xf0] }
  0xe0   :  { %v3173_v7 = vor.u32 %v3593_v63, %v3172_v61 }
  0xe1   :  { %1887 = vmatpush.bf16.msra.mxu0 %v2397_v19  ;;  %1913 = vmatpush.bf16.msra.mxu2 %v2401_v26  ;;  %v1681_v6 = vpop.f32.mrf.mxu0  ;;  %v3577_v19 = vld [vmem:[%s5404_s1 + $0x5f4] sm:$0xf0]  ;;  %v1630_v26 = vadd.f32 %v4993_v14, %v4854_v3 }
  0xe2   :  { %v3044_v14 = vld [vmem:[%s5404_s1 + $0x538] sm:$0xf]  ;;  %v1682_v42 = vadd.f32 %v1681_v6, %v4854_v3 }
  0xe3   :  { %1900 = vmatpush.bf16.msra.mxu1 %v2909_v24  ;;  %1926 = vmatpush.bf16.msra.mxu3 %v2913_v29  ;;  %v1694_v12 = vpop.f32.mrf.mxu1  ;;  %v3110_v24 = vld [vmem:[%s5404_s1 + $0x5f8] sm:$0xf0]  ;;  %v3109_v29 = vor.u32 %v3577_v19, %v3108_v11  ;;  %v3045_v38 = vor.u32 %v3561_v17, %v3044_v14 }
  0xe4   :  { %1888 = vmatmul.bf16.vlgmr.msra.gmra.mxu0 %v3993_v15  ;;  %1914 = vmatmul.bf16.vlgmr.msra.gmra.mxu2 %v3993_v15  ;;  %v3113_v34 = vor.u32 %v3569_v22, %v3110_v24  ;;  %v1695_v60 = vadd.f32 %v1694_v12, %v1682_v42  ;;  %v3521_v12 = vld [vmem:[%s5404_s1 + $0x43c] sm:$0xf] }
  0xe5   :  { %1932 = vmatpush.bf16.msrb.mxu0 %v2853_v30  ;;  %1958 = vmatpush.bf16.msrb.mxu2 %v2857_v32  ;;  %v2601_v30 = vor.u32 %v3441_v20, %v2598_v21  ;;  %v3433_v32 = vld [vmem:[%s5404_s1 + $0x174] sm:$0xf0]  ;;  %v2405_v20 = vor.u32 %v3401_v4, %v2404_v2 }
  0xe6   :  { %1901 = vmatmul.bf16.vlgmr.msra.gmra.mxu1 %v3995_v16  ;;  %1927 = vmatmul.bf16.vlgmr.msra.gmra.mxu3 %v3995_v16  ;;  %v1988_v19 = vmax.f32 %v1695_v60, 0.0 }
  0xe7   :  { %1945 = vmatpush.bf16.msrb.mxu1 %v3365_v31  ;;  %1971 = vmatpush.bf16.msrb.mxu3 %v3369_v36  ;;  %v2532_v31 = vld [vmem:[%s5404_s1 + $0x138] sm:$0xf]  ;;  %v1707_v33 = vpop.f32.mrf.mxu2  ;;  %v2534_v36 = vld [vmem:[%s5404_s1 + $0x178] sm:$0xf0] }
  0xe8   :  { %v1708_v47 = vadd.f32 %v1707_v33, %v4854_v3  ;;  %v2537_v49 = vor.u32 %v3425_v35, %v2534_v36 }
  0xe9   :  { %1933 = vmatpush.bf16.msrb.mxu0 %v2789_v44  ;;  %1959 = vmatpush.bf16.msrb.mxu2 %v2793_v46  ;;  %v1720_v37 = vpop.f32.mrf.mxu3  ;;  %v1643_v44 = vadd.f32 %v5004_v25, %v1630_v26  ;;  %v1617_v46 = vadd.f32 %v4891_v23, %v1604_v28  ;;  %v1683_v48 = vpop.f32.mrf.mxu0  ;;  %v2980_v25 = vld [vmem:[%s5404_s1 + $0x4b8] sm:$0xf]  ;;  %v2001_v26 = vpack.c.bf16 %v1984_v59, %v1984_v59 }
  0xea   :  { %v1721_v0 = vadd.f32 %v1720_v37, %v1708_v47  ;;  %v2981_v1 = vor.u32 %v3545_v53, %v2980_v25 }
  0xeb   :  { %1946 = vmatpush.bf16.msrb.mxu1 %v3301_v45  ;;  %1972 = vmatpush.bf16.msrb.mxu3 %v3305_v50  ;;  %v2533_v45 = vor.u32 %v3433_v32, %v2532_v31  ;;  %v2468_v50 = vld [vmem:[%s5404_s1 + $0xb8] sm:$0xf]  ;;  %v1696_v23 = vpop.f32.mrf.mxu1  ;;  %v1986_v61 = vmax.f32 %v1643_v44, 0.0  ;;  %v1985_v63 = vmax.f32 %v1617_v46, 0.0  ;;  %v2005_v31 = vpack.c.bf16 %v1988_v19, %v1988_v19 }
  0xec   :  { %v1989_v21 = vmax.f32 %v1721_v0, 0.0  ;;  %v2023_v14 = vsel %vm2021_vm0, %v2001_v26, 0 }
  0xed   :  { %1934 = vmatpush.bf16.msrb.mxu0 %v2725_v56  ;;  %1960 = vmatpush.bf16.msrb.mxu2 %v2729_v58  ;;  %v1669_v56 = vadd.f32 %v5041_v43, %v1656_v39  ;;  %v2982_v58 = vld [vmem:[%s5404_s1 + $0x4f8] sm:$0xf0]  ;;  %v2473_v43 = vor.u32 %v3409_v54, %v2470_v55  ;;  %v2035_v35 = vsel %vm2021_vm0, %v2005_v31, 0 }
  0xee   :  { %v2006_v32 = vpack.c.bf16 %v1989_v21, %v1989_v21 }
  0xef   :  { %1947 = vmatpush.bf16.msrb.mxu1 %v3237_v57  ;;  %1973 = vmatpush.bf16.msrb.mxu3 %v3241_v62  ;;  %v3537_v57 = vld [vmem:[%s5404_s1 + $0x4bc] sm:$0xf]  ;;  %v2469_v62 = vor.u32 %v3417_v51, %v2468_v50  ;;  %v1987_v11 = vmax.f32 %v1669_v56, 0.0 }
  0xf0   :  { %v2985_v6 = vor.u32 %v3537_v57, %v2982_v58  ;;  %v2038_v36 = vsel %vm2021_vm0, %v2006_v32, 0 }
  0xf1   :  { %1935 = vmatpush.bf16.msrb.mxu0 %v2661_v5  ;;  %1961 = vmatpush.bf16.msrb.mxu2 %v2665_v8  ;;  %v1709_v5 = vpop.f32.mrf.mxu2  ;;  %v3393_v8 = vld [vmem:[%s5404_s1 + $0x3c] sm:$0xf]  ;;  %v1722_v10 = vpop.f32.mrf.mxu3 }
  0xf2   :  { %v2409_v24 = vor.u32 %v3393_v8, %v2406_v9 }
  0xf3   :  { %1948 = vmatpush.bf16.msrb.mxu1 %v3173_v7  ;;  %1974 = vmatpush.bf16.msrb.mxu3 %v3177_v13  ;;  %v3529_v7 = vld [vmem:[%s5404_s1 + $0x474] sm:$0xf0]  ;;  %v2918_v13 = vld [vmem:[%s5404_s1 + $0x478] sm:$0xf0] }
  0xf4   :  { %v2917_v22 = vor.u32 %v3529_v7, %v2916_v18  ;;  %v2921_v28 = vor.u32 %v3521_v12, %v2918_v13 }
  0xf5   :  { %1936 = vmatpush.bf16.msrb.mxu0 %v2597_v27  ;;  %1962 = vmatpush.bf16.msrb.mxu2 %v2601_v30  ;;  %v2003_v27 = vpack.c.bf16 %v1986_v61, %v1986_v61  ;;  %v2004_v30 = vpack.c.bf16 %v1987_v11, %v1987_v11 }
  0xf7   :  { %1949 = vmatpush.bf16.msrb.mxu1 %v3109_v29  ;;  %1975 = vmatpush.bf16.msrb.mxu3 %v3113_v34  ;;  %v2002_v29 = vpack.c.bf16 %v1985_v63, %v1985_v63  ;;  %v2029_v34 = vsel %vm2021_vm0, %v2003_v27, 0  ;;  %v2032_v17 = vsel %vm2021_vm0, %v2004_v30, 0 }
  0xf9   :  { %1937 = vmatpush.bf16.msrb.mxu0 %v2533_v45  ;;  %1963 = vmatpush.bf16.msrb.mxu2 %v2537_v49  ;;  %v2026_v33 = vsel %vm2021_vm0, %v2002_v29, 0 }
  0xfb   :  { %1950 = vmatpush.bf16.msrb.mxu1 %v3045_v38  ;;  %1976 = vmatpush.bf16.msrb.mxu3 %v3049_v52  ;;  %v5322_v52 = vld [vmem:[%s5407_s3] sm:$0x3] }
  0xfd   :  { %1938 = vmatpush.bf16.msrb.mxu0 %v2469_v62  ;;  %1964 = vmatpush.bf16.msrb.mxu2 %v2473_v43 }
  0xff   :  { %1951 = vmatpush.bf16.msrb.mxu1 %v2981_v1  ;;  %1977 = vmatpush.bf16.msrb.mxu3 %v2985_v6 }
 0x101   :  { %1939 = vmatpush.bf16.msrb.mxu0 %v2405_v20  ;;  %1965 = vmatpush.bf16.msrb.mxu2 %v2409_v24  ;;  %v1733_v37 = vpop.f32.mrf.mxu0 }
 0x102   :  { %v1734_v39 = vadd.f32 %v1733_v37, %v4854_v3 }
 0x103   :  { %1952 = vmatpush.bf16.msrb.mxu1 %v2917_v22  ;;  %1978 = vmatpush.bf16.msrb.mxu3 %v2921_v28  ;;  %v1746_v40 = vpop.f32.mrf.mxu1 }
 0x104   :  { %1940 = vmatmul.bf16.vlgmr.msrb.gmra.mxu0 %v3993_v15  ;;  %1966 = vmatmul.bf16.vlgmr.msrb.gmra.mxu2 %v3993_v15  ;;  %v1747_v41 = vadd.f32 %v1746_v40, %v1734_v39 }
 0x105   :  { %2077 = vmatpush.bf16.msra.mxu0 %v2023_v14  ;;  %2103 = vmatpush.bf16.msra.mxu2 %v2029_v34 }
 0x106   :  { %1979 = vmatmul.bf16.vlgmr.msrb.gmra.mxu3 %v3995_v16  ;;  %1953 = vmatmul.bf16.vlgmr.msrb.gmra.mxu1 %v3995_v16  ;;  %v1990_v44 = vmax.f32 %v1747_v41, 0.0 }
 0x107   :  { %2090 = vmatpush.bf16.msra.mxu1 %v2026_v33  ;;  %2116 = vmatpush.bf16.msra.mxu3 %v2032_v17  ;;  %v1759_v42 = vpop.f32.mrf.mxu2 }
 0x108   :  { %v1760_v45 = vadd.f32 %v1759_v42, %v4854_v3  ;;  %v2007_v47 = vpack.c.bf16 %v1990_v44, %v1990_v44 }
 0x109   :  { %2129 = vmatpush.bf16.msrb.mxu0 %v2035_v35  ;;  %v1772_v46 = vpop.f32.mrf.mxu3  ;;  %v1735_v38 = vpop.f32.mrf.mxu0 }
 0x10a   :  { %v1773_v48 = vadd.f32 %v1772_v46, %v1760_v45  ;;  %v2041_v49 = vsel %vm2021_vm0, %v2007_v47, 0 }
 0x10b   :  { %2142 = vmatpush.bf16.msrb.mxu1 %v2038_v36  ;;  %v1748_v15 = vpop.f32.mrf.mxu1  ;;  %2155 = vmatpush.bf16.msrb.mxu2 %v2041_v49 }
 0x10c   :  { %v1991_v50 = vmax.f32 %v1773_v48, 0.0 }
 0x10e   :  { %v2008_v16 = vpack.c.bf16 %v1991_v50, %v1991_v50 }
 0x10f   :  { %v1761_v51 = vpop.f32.mrf.mxu2 }
 0x110   :  { %v2044_v23 = vsel %vm2021_vm0, %v2008_v16, 0 }
 0x111   :  { %v1774_v25 = vpop.f32.mrf.mxu3  ;;  %2168 = vmatpush.bf16.msrb.mxu3 %v2044_v23 }
 0x114   :  { %3370 = vmatmul.msk.bf16.vlgmr.msra.gmra.mxu0 %vm2017_vm1, %v5322_v52  ;;  %3372 = vmatmul.msk.bf16.vlgmr.msra.gmra.mxu2 %vm2017_vm1, %v5322_v52 }
 0x116   :  { %3371 = vmatmul.msk.bf16.vlgmr.msra.gmra.mxu1 %vm2017_vm1, %v5322_v52  ;;  %3373 = vmatmul.msk.bf16.vlgmr.msra.gmra.mxu3 %vm2017_vm1, %v5322_v52 }
 0x121   :  { %v1785_v53 = vpop.f32.mrf.mxu0 }
 0x122   :  { %v1786_v54 = vadd.f32 %v1785_v53, %v4854_v3 }
 0x123   :  { %v1798_v55 = vpop.f32.mrf.mxu1 }
 0x124   :  { %v1799_v56 = vadd.f32 %v1798_v55, %v1786_v54  ;;  %3374 = vmatmul.msk.bf16.vlgmr.msrb.gmra.mxu0 %vm2017_vm1, %v5322_v52  ;;  %3376 = vmatmul.msk.bf16.vlgmr.msrb.gmra.mxu2 %vm2017_vm1, %v5322_v52 }
 0x126   :  { %v1992_v58 = vmax.f32 %v1799_v56, 0.0  ;;  %3375 = vmatmul.msk.bf16.vlgmr.msrb.gmra.mxu1 %vm2017_vm1, %v5322_v52  ;;  %3377 = vmatmul.msk.bf16.vlgmr.msrb.gmra.mxu3 %vm2017_vm1, %v5322_v52 }
 0x127   :  { %v1811_v57 = vpop.f32.mrf.mxu2 }
 0x128   :  { %v1812_v59 = vadd.f32 %v1811_v57, %v4854_v3  ;;  %v2009_v61 = vpack.c.bf16 %v1992_v58, %v1992_v58 }
 0x129   :  { %v1824_v60 = vpop.f32.mrf.mxu3  ;;  %v1787_v63 = vpop.f32.mrf.mxu0 }
 0x12a   :  { %v1825_v62 = vadd.f32 %v1824_v60, %v1812_v59  ;;  %v2047_v1 = vsel %vm2021_vm0, %v2009_v61, 0 }
 0x12b   :  { %v1800_v0 = vpop.f32.mrf.mxu1  ;;  %2181 = vmatpush.bf16.msra.mxu0 %v2047_v1 }
 0x12c   :  { %v1993_v43 = vmax.f32 %v1825_v62, 0.0 }
 0x12e   :  { %v2010_v2 = vpack.c.bf16 %v1993_v43, %v1993_v43 }
 0x12f   :  { %v1813_v4 = vpop.f32.mrf.mxu2 }
 0x130   :  { %v2050_v5 = vsel %vm2021_vm0, %v2010_v2, 0 }
 0x131   :  { %v1826_v18 = vpop.f32.mrf.mxu3  ;;  %2194 = vmatpush.bf16.msra.mxu1 %v2050_v5 }
 0x134   :  { %3378 = vmatmul.msk.bf16.vlgmr.msra.gmra.mxu0 %vm2017_vm1, %v5322_v52 }
 0x136   :  { %3379 = vmatmul.msk.bf16.vlgmr.msra.gmra.mxu1 %vm2017_vm1, %v5322_v52 }
 0x141   :  { %v1837_v6 = vpop.f32.mrf.mxu0 }
 0x142   :  { %v1838_v7 = vadd.f32 %v1837_v6, %v4854_v3 }
 0x143   :  { %v1850_v8 = vpop.f32.mrf.mxu1 }
 0x144   :  { %v1851_v9 = vadd.f32 %v1850_v8, %v1838_v7 }
 0x146   :  { %v1994_v10 = vmax.f32 %v1851_v9, 0.0 }
 0x147   :  { %v1863_v11 = vpop.f32.mrf.mxu2 }
 0x148   :  { %v1864_v12 = vadd.f32 %v1863_v11, %v4854_v3  ;;  %v2011_v19 = vpack.c.bf16 %v1994_v10, %v1994_v10 }
 0x149   :  { %v1876_v13 = vpop.f32.mrf.mxu3  ;;  %v1839_v21 = vpop.f32.mrf.mxu0 }
 0x14a   :  { %v1877_v20 = vadd.f32 %v1876_v13, %v1864_v12  ;;  %v2053_v24 = vsel %vm2021_vm0, %v2011_v19, 0 }
 0x14b   :  { %v1852_v22 = vpop.f32.mrf.mxu1  ;;  %2207 = vmatpush.bf16.msra.mxu2 %v2053_v24 }
 0x14c   :  { %v1995_v26 = vmax.f32 %v1877_v20, 0.0 }
 0x14e   :  { %v2012_v27 = vpack.c.bf16 %v1995_v26, %v1995_v26  ;;  %3380 = vmatmul.msk.bf16.vlgmr.msra.gmra.mxu2 %vm2017_vm1, %v5322_v52 }
 0x14f   :  { %v1865_v28 = vpop.f32.mrf.mxu2 }
 0x150   :  { %v2056_v29 = vsel %vm2021_vm0, %v2012_v27, 0 }
 0x151   :  { %v1878_v30 = vpop.f32.mrf.mxu3  ;;  %2220 = vmatpush.bf16.msra.mxu3 %v2056_v29 }
 0x154   :  { %3381 = vmatmul.msk.bf16.vlgmr.msra.gmra.mxu3 %vm2017_vm1, %v5322_v52 }
 0x161   :  { %v1889_v31 = vpop.f32.mrf.mxu0 }
 0x162   :  { %v1890_v32 = vadd.f32 %v1889_v31, %v4854_v3 }
 0x163   :  { %v1902_v14 = vpop.f32.mrf.mxu1 }
 0x164   :  { %v1903_v33 = vadd.f32 %v1902_v14, %v1890_v32 }
 0x166   :  { %v1996_v34 = vmax.f32 %v1903_v33, 0.0 }
 0x167   :  { %v1915_v35 = vpop.f32.mrf.mxu2 }
 0x168   :  { %v2013_v17 = vpack.c.bf16 %v1996_v34, %v1996_v34  ;;  %v1916_v36 = vadd.f32 %v1915_v35, %v4854_v3 }
 0x169   :  { %v1928_v37 = vpop.f32.mrf.mxu3  ;;  %v1891_v39 = vpop.f32.mrf.mxu0 }
 0x16a   :  { %v2059_v40 = vsel %vm2021_vm0, %v2013_v17, 0  ;;  %v1929_v42 = vadd.f32 %v1928_v37, %v1916_v36 }
 0x16b   :  { %v1904_v41 = vpop.f32.mrf.mxu1  ;;  %2233 = vmatpush.bf16.msrb.mxu0 %v2059_v40 }
 0x16c   :  { %v1997_v44 = vmax.f32 %v1929_v42, 0.0 }
 0x16e   :  { %3382 = vmatmul.msk.bf16.vlgmr.msrb.gmra.mxu0 %vm2017_vm1, %v5322_v52  ;;  %v2014_v45 = vpack.c.bf16 %v1997_v44, %v1997_v44 }
 0x16f   :  { %v1917_v46 = vpop.f32.mrf.mxu2 }
 0x170   :  { %v2062_v47 = vsel %vm2021_vm0, %v2014_v45, 0 }
 0x171   :  { %v1930_v48 = vpop.f32.mrf.mxu3  ;;  %2246 = vmatpush.bf16.msrb.mxu1 %v2062_v47 }
 0x174   :  { %3383 = vmatmul.msk.bf16.vlgmr.msrb.gmra.mxu1 %vm2017_vm1, %v5322_v52 }
 0x181   :  { %v1941_v38 = vpop.f32.mrf.mxu0 }
 0x182   :  { %v1942_v15 = vadd.f32 %v1941_v38, %v4854_v3 }
 0x183   :  { %v1954_v49 = vpop.f32.mrf.mxu1 }
 0x184   :  { %v1955_v50 = vadd.f32 %v1954_v49, %v1942_v15 }
 0x186   :  { %v1998_v16 = vmax.f32 %v1955_v50, 0.0 }
 0x187   :  { %v1967_v25 = vpop.f32.mrf.mxu2 }
 0x188   :  { %v2015_v51 = vpack.c.bf16 %v1998_v16, %v1998_v16  ;;  %v1968_v53 = vadd.f32 %v1967_v25, %v4854_v3 }
 0x189   :  { %v1980_v23 = vpop.f32.mrf.mxu3  ;;  %v1943_v54 = vpop.f32.mrf.mxu0 }
 0x18a   :  { %v2065_v55 = vsel %vm2021_vm0, %v2015_v51, 0  ;;  %v1981_v56 = vadd.f32 %v1980_v23, %v1968_v53 }
 0x18b   :  { %v1956_v57 = vpop.f32.mrf.mxu1  ;;  %2259 = vmatpush.bf16.msrb.mxu2 %v2065_v55 }
 0x18c   :  { %v1999_v58 = vmax.f32 %v1981_v56, 0.0 }
 0x18e   :  { %3384 = vmatmul.msk.bf16.vlgmr.msrb.gmra.mxu2 %vm2017_vm1, %v5322_v52  ;;  %v2016_v59 = vpack.c.bf16 %v1999_v58, %v1999_v58 }
 0x18f   :  { %v1969_v60 = vpop.f32.mrf.mxu2 }
 0x190   :  { %v2068_v62 = vsel %vm2021_vm0, %v2016_v59, 0 }
 0x191   :  { %v1982_v61 = vpop.f32.mrf.mxu3  ;;  %2272 = vmatpush.bf16.msrb.mxu3 %v2068_v62  ;;  %v2079_v63 = vpop.f32.mrf.mxu0 }
 0x193   :  { %v2092_v3 = vpop.f32.mrf.mxu1 }
 0x194   :  { %3385 = vmatmul.msk.bf16.vlgmr.msrb.gmra.mxu3 %vm2017_vm1, %v5322_v52  ;;  %3644 = vtanh.f32 %v2092_v3 }
 0x195   :  { %3646 = vtanh.f32 %v2079_v63 }
 0x197   :  { %v2105_v43 = vpop.f32.mrf.mxu2 }
 0x199   :  { %v2118_v1 = vpop.f32.mrf.mxu3  ;;  %v2081_v5 = vpop.f32.mrf.mxu0 }
 0x19a   :  { %v3645_v0 = vpop.eup %3644  ;;  %3648 = vtanh.f32 %v2118_v1 }
 0x19b   :  { %v3647_v2 = vpop.eup %3646  ;;  %v2310_v4 = vrot.slane %v3645_v0, 4  ;;  %v2094_v18 = vpop.f32.mrf.mxu1  ;;  %3650 = vtanh.f32 %v2105_v43 }
 0x19d   :  { %v2318_v6 = vsel %vm2021_vm0, %v3647_v2, %v2310_v4 }
 0x19e   :  { %2334 = vst [vmem:[%s5408_s4] sm:$0xff] %v2318_v6 }
 0x19f   :  { %v2107_v10 = vpop.f32.mrf.mxu2 }
 0x1a0   :  { %v3649_v52 = vpop.eup %3648 }
 0x1a1   :  { %v3651_v7 = vpop.eup %3650  ;;  %v2311_v8 = vrot.slane %v3649_v52, 4  ;;  %v2120_v9 = vpop.f32.mrf.mxu3 }
 0x1a2   :  { %v2131_v12 = vpop.f32.mrf.mxu0 }
 0x1a3   :  { %v2144_v11 = vpop.f32.mrf.mxu1  ;;  %v2319_v13 = vsel %vm2021_vm0, %v3651_v7, %v2311_v8 }
 0x1a4   :  { %3652 = vtanh.f32 %v2144_v11  ;;  %2335 = vst [vmem:[%s5408_s4 + $0x8] sm:$0xff] %v2319_v13 }
 0x1a5   :  { %3654 = vtanh.f32 %v2131_v12 }
 0x1a7   :  { %v2157_v21 = vpop.f32.mrf.mxu2 }
 0x1a9   :  { %v2170_v20 = vpop.f32.mrf.mxu3 }
 0x1aa   :  { %v3653_v19 = vpop.eup %3652  ;;  %3656 = vtanh.f32 %v2170_v20  ;;  %v2133_v27 = vpop.f32.mrf.mxu0 }
 0x1ab   :  { %v3655_v22 = vpop.eup %3654  ;;  %v2312_v24 = vrot.slane %v3653_v19, 4  ;;  %v2146_v26 = vpop.f32.mrf.mxu1  ;;  %3658 = vtanh.f32 %v2157_v21 }
 0x1ad   :  { %v2320_v28 = vsel %vm2021_vm0, %v3655_v22, %v2312_v24 }
 0x1ae   :  { %2336 = vst [vmem:[%s5408_s4 + $0x10] sm:$0xff] %v2320_v28 }
 0x1af   :  { %v2159_v14 = vpop.f32.mrf.mxu2 }
 0x1b0   :  { %v3657_v29 = vpop.eup %3656 }
 0x1b1   :  { %v3659_v30 = vpop.eup %3658  ;;  %v2313_v31 = vrot.slane %v3657_v29, 4  ;;  %v2172_v32 = vpop.f32.mrf.mxu3 }
 0x1b2   :  { %v2183_v34 = vpop.f32.mrf.mxu0 }
 0x1b3   :  { %v2196_v33 = vpop.f32.mrf.mxu1  ;;  %v2321_v17 = vsel %vm2021_vm0, %v3659_v30, %v2313_v31 }
 0x1b4   :  { %3660 = vtanh.f32 %v2196_v33  ;;  %2337 = vst [vmem:[%s5408_s4 + $0x18] sm:$0xff] %v2321_v17 }
 0x1b5   :  { %3662 = vtanh.f32 %v2183_v34 }
 0x1ba   :  { %v3661_v35 = vpop.eup %3660  ;;  %v2185_v40 = vpop.f32.mrf.mxu0 }
 0x1bb   :  { %v3663_v36 = vpop.eup %3662  ;;  %v2314_v37 = vrot.slane %v3661_v35, 4  ;;  %v2198_v39 = vpop.f32.mrf.mxu1 }
 0x1bd   :  { %v2322_v41 = vsel %vm2021_vm0, %v3663_v36, %v2314_v37 }
 0x1be   :  { %2338 = vst [vmem:[%s5408_s4 + $0x20] sm:$0xff] %v2322_v41 }
 0x1d1   :  { %v2209_v42 = vpop.f32.mrf.mxu2 }
 0x1d2   :  { %3664 = vtanh.f32 %v2209_v42 }
 0x1d7   :  { %v2222_v44 = vpop.f32.mrf.mxu3 }
 0x1d8   :  { %3666 = vtanh.f32 %v2222_v44  ;;  %v3665_v46 = vpop.eup %3664 }
 0x1d9   :  { %v2211_v45 = vpop.f32.mrf.mxu2 }
 0x1de   :  { %v3667_v47 = vpop.eup %3666 }
 0x1df   :  { %v2315_v48 = vrot.slane %v3667_v47, 4  ;;  %v2224_v38 = vpop.f32.mrf.mxu3 }
 0x1e1   :  { %v2323_v15 = vsel %vm2021_vm0, %v3665_v46, %v2315_v48 }
 0x1e2   :  { %2339 = vst [vmem:[%s5408_s4 + $0x28] sm:$0xff] %v2323_v15 }
 0x1eb   :  { %v2235_v49 = vpop.f32.mrf.mxu0 }
 0x1f1   :  { %v2248_v50 = vpop.f32.mrf.mxu1 }
 0x1f2   :  { %3668 = vtanh.f32 %v2248_v50 }
 0x1f3   :  { %v2237_v16 = vpop.f32.mrf.mxu0  ;;  %3670 = vtanh.f32 %v2235_v49 }
 0x1f8   :  { %v3669_v51 = vpop.eup %3668 }
 0x1f9   :  { %v2250_v25 = vpop.f32.mrf.mxu1  ;;  %v2316_v23 = vrot.slane %v3669_v51, 4  ;;  %v3671_v53 = vpop.eup %3670 }
 0x1fb   :  { %v2324_v54 = vsel %vm2021_vm0, %v3671_v53, %v2316_v23 }
 0x1fc   :  { %2340 = vst [vmem:[%s5408_s4 + $0x30] sm:$0xff] %v2324_v54 }
 0x211   :  { %v2261_v55 = vpop.f32.mrf.mxu2 }
 0x212   :  { %3672 = vtanh.f32 %v2261_v55 }
 0x217   :  { %v2274_v56 = vpop.f32.mrf.mxu3 }
 0x218   :  { %3674 = vtanh.f32 %v2274_v56  ;;  %v3673_v58 = vpop.eup %3672 }
 0x219   :  { %v2263_v57 = vpop.f32.mrf.mxu2 }
 0x21e   :  { %v3675_v59 = vpop.eup %3674 }
 0x21f   :  { %v2317_v60 = vrot.slane %v3675_v59, 4  ;;  %v2276_v61 = vpop.f32.mrf.mxu3 }
 0x221   :  { %v2325_v62 = vsel %vm2021_vm0, %v3673_v58, %v2317_v60 }
 0x222   :  { %2341 = vst [vmem:[%s5408_s4 + $0x38] sm:$0xff] %v2325_v62 }

</bundles_post_ra>
